<compile_context>
chip_gen: v7x
topology: tpu7x:2x2x1
jax: 0.10.0
libtpu: 0.0.40
codegen_flags: <defaults>
</compile_context>

<pallas_src>
import functools

import jax
import jax.numpy as jnp
from jax.experimental import pallas as pl
from jax.experimental.pallas import tpu as pltpu


PRELU_SLOPE = 0.25   # nn.PReLU() default init (fixed constant here)


# ----------------------------------------------------------------------------
# Fused Pallas kernel: one full WGDN forward per grid step (one batch item)
# ----------------------------------------------------------------------------
def _wgdn_fused_kernel(adjavg_ref, x_ref,
                       w_e0_ref, b_e0_ref, w_e1_ref, b_e1_ref,
                       w_d0_ref, b_d0_ref, w_d1_ref, b_d1_ref,
                       n0_ref, n1_ref, o_ref,
                       *, n_nodes, gamma_min, gamma_max, slope, beta):
    f32 = jnp.float32
    bf16 = jnp.bfloat16
    d_in = o_ref.shape[-1]

    adjavg = adjavg_ref[...]                  # (2N, N) bf16 : [lap_adj ; avg_adj]
    adj = adjavg[:n_nodes, :]                 # (N, N) bf16 (16-sublane aligned slice)

    # ---------------- Encoder layer 0 : PReLU( adj @ x @ W0 + b0 ) ----------
    # din < dout -> (adj @ x) @ W0 ordering (narrower N^2 contraction).
    ax = jnp.dot(adj, x_ref[...].astype(bf16), preferred_element_type=f32)
    z1 = jnp.dot(ax.astype(bf16), w_e0_ref[...], preferred_element_type=f32) \
        + b_e0_ref[...]
    h1 = jnp.where(z1 > 0, z1, slope * z1)                       # PReLU, f32

    # ---------------- Encoder layer 1 (last, identity activation) -----------
    h1w = jnp.dot(h1.astype(bf16), w_e1_ref[...], preferred_element_type=f32)
    h2 = jnp.dot(adj, h1w.astype(bf16), preferred_element_type=f32) + b_e1_ref[...]

    # ------------- noise injection: h + std(h, unbiased) * beta * N(0,1) ----
    def _noised(h, noise):
        cnt = h.shape[0] * h.shape[1]
        mu = jnp.sum(h, keepdims=True) / cnt                      # (1,1)
        var = jnp.sum((h - mu) * (h - mu), keepdims=True) / (cnt - 1)
        return h + (jnp.sqrt(var) * beta) * noise

    d0 = _noised(h2, n0_ref[...])

    # ---------------- Decoder layer 0 : Wiener deconv approx + PReLU --------
    # h = d0 @ W + b ; [p; q] = [adj; avg] @ h in one stacked MXU pass.
    hd0 = jnp.dot(d0.astype(bf16), w_d0_ref[...], preferred_element_type=f32) \
        + b_d0_ref[...]
    pq = jnp.dot(adjavg, hd0.astype(bf16), preferred_element_type=f32)   # (2N, hid)
    p, q = pq[:n_nodes, :], pq[n_nodes:, :]
    # transform='max' over the gamma set == single sign-select (monotone in g)
    z = p + jnp.where(q >= 0, gamma_max, gamma_min) * q
    d_prev = jnp.where(z > 0, z, slope * z)

    # ---------------- Decoder layer 1 (last, skip, identity act) ------------
    adv_enc = _noised(h1, n1_ref[...])
    # One stacked feature matmul for both skip operands (shared W_d1 RHS).
    lhs2 = jnp.concatenate([adv_enc, d_prev], axis=0).astype(bf16)   # (2N, hid)
    hab = jnp.dot(lhs2, w_d1_ref[...], preferred_element_type=f32) + b_d1_ref[...]
    ha, hb = hab[:n_nodes, :], hab[n_nodes:, :]                      # (N, d_in) each
    # One stacked N^2 matmul: [adj; avg] @ [ha | hb]  -> all four propagations.
    rhs2 = jnp.concatenate([ha, hb], axis=-1).astype(bf16)           # (N, 2*d_in)
    full = jnp.dot(adjavg, rhs2, preferred_element_type=f32)         # (2N, 2*d_in)
    pa, pb = full[:n_nodes, :d_in], full[:n_nodes, d_in:]
    qa, qb = full[n_nodes:, :d_in], full[n_nodes:, d_in:]
    recons = (pa + pb
              + jnp.where(qa >= 0, gamma_max, gamma_min) * qa
              + jnp.where(qb >= 0, gamma_max, gamma_min) * qb)
    o_ref[...] = recons.astype(o_ref.dtype)


# ----------------------------------------------------------------------------
# One-time preparation (static graph + params): stacked bf16 adjacency,
# bf16 weights, row-vector f32 biases.  Do NOT redo this per forward.
# ----------------------------------------------------------------------------
def prepare_wgdn(params, lap_adj, avg_adj):
    adjavg = jnp.concatenate([lap_adj, avg_adj], axis=0).astype(jnp.bfloat16)
    prep = {}
    for name in ("enc_w0", "enc_w1", "dec_w0", "dec_w1"):
        prep[name] = params[name].astype(jnp.bfloat16)
    for name in ("enc_b0", "enc_b1", "dec_b0", "dec_b1"):
        prep[name] = params[name].reshape(1, -1).astype(jnp.float32)
    return prep, adjavg


# ----------------------------------------------------------------------------
# pallas_call wrapper : B independent WGDN forwards (fast / dense-adj path)
# ----------------------------------------------------------------------------
def wgdn_forward(prep, adjavg, x, noise0, noise1, *, gamma=(0.5, 1.0), beta=1.0):
    B, N, in_dim = x.shape
    hid = prep["enc_w0"].shape[1]
    assert adjavg.shape == (2 * N, N)

    kernel = functools.partial(
        _wgdn_fused_kernel,
        n_nodes=N,
        gamma_min=float(min(gamma)),
        gamma_max=float(max(gamma)),
        slope=PRELU_SLOPE,
        beta=float(beta),
    )

    # Constant index_map => block stays VMEM-resident across the whole batch.
    def resident(shape):
        return pl.BlockSpec(shape, lambda b, _n=len(shape): (0,) * _n)

    # Per-batch-item streamed operand (leading batch dim squeezed away).
    def per_item(tail):
        return pl.BlockSpec((None,) + tail,
                            lambda b, _n=len(tail): (b,) + (0,) * _n)

    operands = (
        adjavg, x,
        prep["enc_w0"], prep["enc_b0"], prep["enc_w1"], prep["enc_b1"],
        prep["dec_w0"], prep["dec_b0"], prep["dec_w1"], prep["dec_b1"],
        noise0, noise1,
    )
    in_specs = [
        resident(adjavg.shape),
        per_item((N, in_dim)),
        resident(prep["enc_w0"].shape), resident(prep["enc_b0"].shape),
        resident(prep["enc_w1"].shape), resident(prep["enc_b1"].shape),
        resident(prep["dec_w0"].shape), resident(prep["dec_b0"].shape),
        resident(prep["dec_w1"].shape), resident(prep["dec_b1"].shape),
        per_item((N, hid)), per_item((N, hid)),
    ]

    return pl.pallas_call(
        kernel,
        out_shape=jax.ShapeDtypeStruct((B, N, in_dim), jnp.float32),
        grid_spec=pltpu.PrefetchScalarGridSpec(
            num_scalar_prefetch=0,
            grid=(B,),
            in_specs=in_specs,
            out_specs=per_item((N, in_dim)),
        ),
        compiler_params=pltpu.CompilerParams(
            dimension_semantics=("parallel",)),   # engages both v7x TCs
    )(*operands)


# ----------------------------------------------------------------------------
# Pure-JAX f32 reference (mirrors the kernel's math; explicit gamma max)
# ----------------------------------------------------------------------------
def _prelu(z, s):
    return jnp.where(z > 0, z, s * z)


def wgdn_reference_single(params, x, adj, avg, n0, n1, *, gamma=(0.5, 1.0), beta=1.0):
    h1 = _prelu(adj @ (x @ params["enc_w0"]) + params["enc_b0"], PRELU_SLOPE)
    h2 = adj @ (h1 @ params["enc_w1"]) + params["enc_b1"]
    d0 = h2 + jnp.std(h2, ddof=1) * beta * n0          # torch .std() is unbiased

    def deconv(xin, w, b):
        h = xin @ w + b
        p, q = adj @ h, avg @ h
        o = p + gamma[0] * q
        for g in gamma[1:]:
            o = jnp.maximum(o, p + g * q)
        return o

    d_prev = _prelu(deconv(d0, params["dec_w0"], params["dec_b0"]), PRELU_SLOPE)
    adv = h1 + jnp.std(h1, ddof=1) * beta * n1
    da = deconv(adv, params["dec_w1"], params["dec_b1"])
    db = deconv(d_prev, params["dec_w1"], params["dec_b1"])
    return da + db


# ----------------------------------------------------------------------------
# parameter init (encoder: 2 GCN layers, decoder: 2 deconv layers)
# ----------------------------------------------------------------------------
def init_wgdn_params(key, in_dim, hid_dim, num_layer):
    dims_enc = [in_dim] + [hid_dim] * num_layer          # [in, hid, hid]
    dims_dec = [hid_dim] * num_layer + [in_dim]          # [hid, hid, in]
    params = {}
    for i in range(num_layer):
        key, k1 = jax.random.split(key)
        fan_in, fan_out = dims_enc[i], dims_enc[i + 1]
        params[f"enc_w{i}"] = jax.random.normal(k1, (fan_in, fan_out), jnp.float32) \
            * jnp.sqrt(2.0 / (fan_in + fan_out))
        params[f"enc_b{i}"] = jnp.zeros((fan_out,), jnp.float32)
    for i in range(num_layer):
        key, k1 = jax.random.split(key)
        fan_in, fan_out = dims_dec[i], dims_dec[i + 1]
        params[f"dec_w{i}"] = jax.random.normal(k1, (fan_in, fan_out), jnp.float32) \
            * jnp.sqrt(2.0 / (fan_in + fan_out))
        params[f"dec_b{i}"] = jnp.zeros((fan_out,), jnp.float32)
    return params


# ----------------------------------------------------------------------------
# main
# ----------------------------------------------------------------------------
if __name__ == "__main__":
    B, N, IN_DIM, HID_DIM, NUM_LAYER = 4, 64, 16, 32, 2
    GAMMA = (0.5, 1.0)
    BETA = 1.0

    root = jax.random.PRNGKey(0)
    k_x, k_adj, k_avg, k_par, k_n0, k_n1 = jax.random.split(root, 6)

    # B independent forwards of the same module (same graph/params, fresh
    # features + noise draws), batched over the kernel's parallel grid axis.
    x = jax.random.normal(k_x, (B, N, IN_DIM), jnp.float32)

    # dense, row-normalized propagation matrices (deterministic synthetic graph)
    a = jnp.abs(jax.random.normal(k_adj, (N, N), jnp.float32))
    a = 0.5 * (a + a.T) + jnp.eye(N)
    lap_adj = a / jnp.sum(a, axis=1, keepdims=True)
    bmat = jnp.abs(jax.random.normal(k_avg, (N, N), jnp.float32)) + jnp.eye(N)
    avg_adj = bmat / jnp.sum(bmat, axis=1, keepdims=True)

    params = init_wgdn_params(k_par, IN_DIM, HID_DIM, NUM_LAYER)

    # raw N(0,1) noise per forward (coef = std * beta is computed in-kernel)
    noise0 = jax.random.normal(k_n0, (B, N, HID_DIM), jnp.float32)
    noise1 = jax.random.normal(k_n1, (B, N, HID_DIM), jnp.float32)

    # one-time static-graph / static-param preparation (hoisted out of forward)
    prep, adjavg = prepare_wgdn(params, lap_adj, avg_adj)
    adjavg = jax.block_until_ready(adjavg)

    recons = wgdn_forward(prep, adjavg, x, noise0, noise1, gamma=GAMMA, beta=BETA)
    recons = jax.block_until_ready(recons)

    assert recons.shape == (B, N, IN_DIM)
    assert bool(jnp.all(jnp.isfinite(recons)))

    # loose check vs f32 reference (kernel propagates adjacency/weights in bf16)
    ref = jnp.stack([
        wgdn_reference_single(params, x[b], lap_adj, avg_adj,
                              noise0[b], noise1[b], gamma=GAMMA, beta=BETA)
        for b in range(B)
    ])
    err = float(jnp.max(jnp.abs(recons - ref)))
    scale = max(float(jnp.max(jnp.abs(ref))), 1.0)
    assert err <= 5e-2 * scale, f"mismatch vs f32 reference: {err}"

    print("KERNEL_OK")
</pallas_src>

<mosaic_0001>
module attributes {stable_mosaic.version = 11 : i64} {
  func.func @_wgdn_fused_kernel(%arg0: i32, %arg1: memref<128x64xbf16, #tpu.memory_space<vmem>>, %arg2: memref<1x64x16xf32, #tpu.memory_space<vmem>>, %arg3: memref<16x32xbf16, #tpu.memory_space<vmem>>, %arg4: memref<1x32xf32, #tpu.memory_space<vmem>>, %arg5: memref<32x32xbf16, #tpu.memory_space<vmem>>, %arg6: memref<1x32xf32, #tpu.memory_space<vmem>>, %arg7: memref<32x32xbf16, #tpu.memory_space<vmem>>, %arg8: memref<1x32xf32, #tpu.memory_space<vmem>>, %arg9: memref<32x16xbf16, #tpu.memory_space<vmem>>, %arg10: memref<1x16xf32, #tpu.memory_space<vmem>>, %arg11: memref<1x64x32xf32, #tpu.memory_space<vmem>>, %arg12: memref<1x64x32xf32, #tpu.memory_space<vmem>>, %arg13: memref<1x64x16xf32, #tpu.memory_space<vmem>>) attributes {dimension_semantics = [#tpu.dimension_semantics<parallel>], iteration_bounds = array<i64: 4>, scalar_prefetch = 0 : i64, scratch_operands = 0 : i64, tpu.core_type = #tpu.core_type<tc>, window_params = [{pipeline_mode = #tpu.pipeline_mode<synchronous>, transform_indices = @transform_0, window_bounds = array<i64: 128, 64>}, {transform_indices = @transform_1, window_bounds = array<i64: 1, 64, 16>}, {pipeline_mode = #tpu.pipeline_mode<synchronous>, transform_indices = @transform_2, window_bounds = array<i64: 16, 32>}, {pipeline_mode = #tpu.pipeline_mode<synchronous>, transform_indices = @transform_3, window_bounds = array<i64: 1, 32>}, {pipeline_mode = #tpu.pipeline_mode<synchronous>, transform_indices = @transform_4, window_bounds = array<i64: 32, 32>}, {pipeline_mode = #tpu.pipeline_mode<synchronous>, transform_indices = @transform_5, window_bounds = array<i64: 1, 32>}, {pipeline_mode = #tpu.pipeline_mode<synchronous>, transform_indices = @transform_6, window_bounds = array<i64: 32, 32>}, {pipeline_mode = #tpu.pipeline_mode<synchronous>, transform_indices = @transform_7, window_bounds = array<i64: 1, 32>}, {pipeline_mode = #tpu.pipeline_mode<synchronous>, transform_indices = @transform_8, window_bounds = array<i64: 32, 16>}, {pipeline_mode = #tpu.pipeline_mode<synchronous>, transform_indices = @transform_9, window_bounds = array<i64: 1, 16>}, {transform_indices = @transform_10, window_bounds = array<i64: 1, 64, 32>}, {transform_indices = @transform_11, window_bounds = array<i64: 1, 64, 32>}, {transform_indices = @transform_12, window_bounds = array<i64: 1, 64, 16>}]} {
    %c0 = arith.constant 0 : index
    %c0_0 = arith.constant 0 : index
    %0 = vector.load %arg1[%c0, %c0_0] : memref<128x64xbf16, #tpu.memory_space<vmem>>, vector<128x64xbf16>
    %1 = vector.extract_strided_slice %0 {offsets = [0, 0], sizes = [64, 64], strides = [1, 1]} : vector<128x64xbf16> to vector<64x64xbf16>
    %c0_1 = arith.constant 0 : index
    %c0_2 = arith.constant 0 : index
    %c0_3 = arith.constant 0 : index
    %2 = vector.load %arg2[%c0_1, %c0_2, %c0_3] : memref<1x64x16xf32, #tpu.memory_space<vmem>>, vector<1x64x16xf32>
    %3 = vector.shape_cast %2 : vector<1x64x16xf32> to vector<64x16xf32>
    %4 = arith.truncf %3 : vector<64x16xf32> to vector<64x16xbf16>
    %cst = arith.constant dense<0.000000e+00> : vector<64x16xf32>
    %5 = tpu.matmul %1, %4, %cst {dimension_numbers = #tpu.dot_dimension_numbers<[1], [0], [0], [1], [0, 0, 1, 1], [], []>} : vector<64x64xbf16>, vector<64x16xbf16>, vector<64x16xf32> -> vector<64x16xf32>
    %6 = arith.truncf %5 : vector<64x16xf32> to vector<64x16xbf16>
    %c0_4 = arith.constant 0 : index
    %c0_5 = arith.constant 0 : index
    %7 = vector.load %arg3[%c0_4, %c0_5] : memref<16x32xbf16, #tpu.memory_space<vmem>>, vector<16x32xbf16>
    %cst_6 = arith.constant dense<0.000000e+00> : vector<64x32xf32>
    %8 = tpu.matmul %6, %7, %cst_6 {dimension_numbers = #tpu.dot_dimension_numbers<[1], [0], [0], [1], [0, 0, 1, 1], [], []>} : vector<64x16xbf16>, vector<16x32xbf16>, vector<64x32xf32> -> vector<64x32xf32>
    %c0_7 = arith.constant 0 : index
    %c0_8 = arith.constant 0 : index
    %9 = vector.load %arg4[%c0_7, %c0_8] : memref<1x32xf32, #tpu.memory_space<vmem>>, vector<1x32xf32>
    %10 = vector.broadcast %9 : vector<1x32xf32> to vector<64x32xf32>
    %11 = arith.addf %8, %10 : vector<64x32xf32>
    %cst_9 = arith.constant 0.000000e+00 : f32
    %12 = vector.broadcast %cst_9 : f32 to vector<64x32xf32>
    %13 = arith.cmpf ogt, %11, %12 : vector<64x32xf32>
    %cst_10 = arith.constant 2.500000e-01 : f32
    %14 = vector.broadcast %cst_10 : f32 to vector<64x32xf32>
    %15 = arith.mulf %14, %11 : vector<64x32xf32>
    %16 = arith.select %13, %11, %15 : vector<64x32xi1>, vector<64x32xf32>
    %17 = arith.truncf %16 : vector<64x32xf32> to vector<64x32xbf16>
    %c0_11 = arith.constant 0 : index
    %c0_12 = arith.constant 0 : index
    %18 = vector.load %arg5[%c0_11, %c0_12] : memref<32x32xbf16, #tpu.memory_space<vmem>>, vector<32x32xbf16>
    %cst_13 = arith.constant dense<0.000000e+00> : vector<64x32xf32>
    %19 = tpu.matmul %17, %18, %cst_13 {dimension_numbers = #tpu.dot_dimension_numbers<[1], [0], [0], [1], [0, 0, 1, 1], [], []>} : vector<64x32xbf16>, vector<32x32xbf16>, vector<64x32xf32> -> vector<64x32xf32>
    %20 = arith.truncf %19 : vector<64x32xf32> to vector<64x32xbf16>
    %cst_14 = arith.constant dense<0.000000e+00> : vector<64x32xf32>
    %21 = tpu.matmul %1, %20, %cst_14 {dimension_numbers = #tpu.dot_dimension_numbers<[1], [0], [0], [1], [0, 0, 1, 1], [], []>} : vector<64x64xbf16>, vector<64x32xbf16>, vector<64x32xf32> -> vector<64x32xf32>
    %c0_15 = arith.constant 0 : index
    %c0_16 = arith.constant 0 : index
    %22 = vector.load %arg6[%c0_15, %c0_16] : memref<1x32xf32, #tpu.memory_space<vmem>>, vector<1x32xf32>
    %23 = vector.broadcast %22 : vector<1x32xf32> to vector<64x32xf32>
    %24 = arith.addf %21, %23 : vector<64x32xf32>
    %c0_17 = arith.constant 0 : index
    %c0_18 = arith.constant 0 : index
    %c0_19 = arith.constant 0 : index
    %25 = vector.load %arg11[%c0_17, %c0_18, %c0_19] : memref<1x64x32xf32, #tpu.memory_space<vmem>>, vector<1x64x32xf32>
    %26 = vector.shape_cast %25 : vector<1x64x32xf32> to vector<64x32xf32>
    %27 = vector.shape_cast %24 : vector<64x32xf32> to vector<1x64x32xf32>
    %cst_20 = arith.constant dense<0.000000e+00> : vector<1xf32>
    %28 = vector.multi_reduction <add>, %27, %cst_20 [1, 2] : vector<1x64x32xf32> to vector<1xf32>
    %29 = vector.shape_cast %28 : vector<1xf32> to vector<1x1x1xf32>
    %30 = vector.extract %29[0, 0, 0] : f32 from vector<1x1x1xf32>
    %31 = vector.broadcast %30 : f32 to vector<1x1xf32>
    %cst_21 = arith.constant 2.048000e+03 : f32
    %32 = vector.broadcast %cst_21 : f32 to vector<1x1xf32>
    %33 = arith.divf %31, %32 : vector<1x1xf32>
    %34 = vector.broadcast %33 : vector<1x1xf32> to vector<64x32xf32>
    %35 = arith.subf %24, %34 : vector<64x32xf32>
    %36 = vector.broadcast %33 : vector<1x1xf32> to vector<64x32xf32>
    %37 = arith.subf %24, %36 : vector<64x32xf32>
    %38 = arith.mulf %35, %37 : vector<64x32xf32>
    %39 = vector.shape_cast %38 : vector<64x32xf32> to vector<1x64x32xf32>
    %cst_22 = arith.constant dense<0.000000e+00> : vector<1xf32>
    %40 = vector.multi_reduction <add>, %39, %cst_22 [1, 2] : vector<1x64x32xf32> to vector<1xf32>
    %41 = vector.shape_cast %40 : vector<1xf32> to vector<1x1x1xf32>
    %42 = vector.extract %41[0, 0, 0] : f32 from vector<1x1x1xf32>
    %43 = vector.broadcast %42 : f32 to vector<1x1xf32>
    %cst_23 = arith.constant 2.047000e+03 : f32
    %44 = vector.broadcast %cst_23 : f32 to vector<1x1xf32>
    %45 = arith.divf %43, %44 : vector<1x1xf32>
    %46 = math.sqrt %45 : vector<1x1xf32>
    %cst_24 = arith.constant 1.000000e+00 : f32
    %47 = vector.broadcast %cst_24 : f32 to vector<1x1xf32>
    %48 = arith.mulf %46, %47 : vector<1x1xf32>
    %49 = vector.broadcast %48 : vector<1x1xf32> to vector<64x32xf32>
    %50 = arith.mulf %49, %26 : vector<64x32xf32>
    %51 = arith.addf %24, %50 : vector<64x32xf32>
    %52 = arith.truncf %51 : vector<64x32xf32> to vector<64x32xbf16>
    %c0_25 = arith.constant 0 : index
    %c0_26 = arith.constant 0 : index
    %53 = vector.load %arg7[%c0_25, %c0_26] : memref<32x32xbf16, #tpu.memory_space<vmem>>, vector<32x32xbf16>
    %cst_27 = arith.constant dense<0.000000e+00> : vector<64x32xf32>
    %54 = tpu.matmul %52, %53, %cst_27 {dimension_numbers = #tpu.dot_dimension_numbers<[1], [0], [0], [1], [0, 0, 1, 1], [], []>} : vector<64x32xbf16>, vector<32x32xbf16>, vector<64x32xf32> -> vector<64x32xf32>
    %c0_28 = arith.constant 0 : index
    %c0_29 = arith.constant 0 : index
    %55 = vector.load %arg8[%c0_28, %c0_29] : memref<1x32xf32, #tpu.memory_space<vmem>>, vector<1x32xf32>
    %56 = vector.broadcast %55 : vector<1x32xf32> to vector<64x32xf32>
    %57 = arith.addf %54, %56 : vector<64x32xf32>
    %58 = arith.truncf %57 : vector<64x32xf32> to vector<64x32xbf16>
    %cst_30 = arith.constant dense<0.000000e+00> : vector<128x32xf32>
    %59 = tpu.matmul %0, %58, %cst_30 {dimension_numbers = #tpu.dot_dimension_numbers<[1], [0], [0], [1], [0, 0, 1, 1], [], []>} : vector<128x64xbf16>, vector<64x32xbf16>, vector<128x32xf32> -> vector<128x32xf32>
    %60 = vector.extract_strided_slice %59 {offsets = [0, 0], sizes = [64, 32], strides = [1, 1]} : vector<128x32xf32> to vector<64x32xf32>
    %61 = vector.extract_strided_slice %59 {offsets = [64, 0], sizes = [64, 32], strides = [1, 1]} : vector<128x32xf32> to vector<64x32xf32>
    %cst_31 = arith.constant 0.000000e+00 : f32
    %62 = vector.broadcast %cst_31 : f32 to vector<64x32xf32>
    %63 = arith.cmpf oge, %61, %62 : vector<64x32xf32>
    %cst_32 = arith.constant 1.000000e+00 : f32
    %cst_33 = arith.constant 5.000000e-01 : f32
    %64 = vector.broadcast %cst_32 : f32 to vector<64x32xf32>
    %65 = vector.broadcast %cst_33 : f32 to vector<64x32xf32>
    %66 = arith.select %63, %64, %65 : vector<64x32xi1>, vector<64x32xf32>
    %67 = arith.mulf %66, %61 : vector<64x32xf32>
    %68 = arith.addf %60, %67 : vector<64x32xf32>
    %cst_34 = arith.constant 0.000000e+00 : f32
    %69 = vector.broadcast %cst_34 : f32 to vector<64x32xf32>
    %70 = arith.cmpf ogt, %68, %69 : vector<64x32xf32>
    %cst_35 = arith.constant 2.500000e-01 : f32
    %71 = vector.broadcast %cst_35 : f32 to vector<64x32xf32>
    %72 = arith.mulf %71, %68 : vector<64x32xf32>
    %73 = arith.select %70, %68, %72 : vector<64x32xi1>, vector<64x32xf32>
    %c0_36 = arith.constant 0 : index
    %c0_37 = arith.constant 0 : index
    %c0_38 = arith.constant 0 : index
    %74 = vector.load %arg12[%c0_36, %c0_37, %c0_38] : memref<1x64x32xf32, #tpu.memory_space<vmem>>, vector<1x64x32xf32>
    %75 = vector.shape_cast %74 : vector<1x64x32xf32> to vector<64x32xf32>
    %76 = vector.shape_cast %16 : vector<64x32xf32> to vector<1x64x32xf32>
    %cst_39 = arith.constant dense<0.000000e+00> : vector<1xf32>
    %77 = vector.multi_reduction <add>, %76, %cst_39 [1, 2] : vector<1x64x32xf32> to vector<1xf32>
    %78 = vector.shape_cast %77 : vector<1xf32> to vector<1x1x1xf32>
    %79 = vector.extract %78[0, 0, 0] : f32 from vector<1x1x1xf32>
    %80 = vector.broadcast %79 : f32 to vector<1x1xf32>
    %cst_40 = arith.constant 2.048000e+03 : f32
    %81 = vector.broadcast %cst_40 : f32 to vector<1x1xf32>
    %82 = arith.divf %80, %81 : vector<1x1xf32>
    %83 = vector.broadcast %82 : vector<1x1xf32> to vector<64x32xf32>
    %84 = arith.subf %16, %83 : vector<64x32xf32>
    %85 = vector.broadcast %82 : vector<1x1xf32> to vector<64x32xf32>
    %86 = arith.subf %16, %85 : vector<64x32xf32>
    %87 = arith.mulf %84, %86 : vector<64x32xf32>
    %88 = vector.shape_cast %87 : vector<64x32xf32> to vector<1x64x32xf32>
    %cst_41 = arith.constant dense<0.000000e+00> : vector<1xf32>
    %89 = vector.multi_reduction <add>, %88, %cst_41 [1, 2] : vector<1x64x32xf32> to vector<1xf32>
    %90 = vector.shape_cast %89 : vector<1xf32> to vector<1x1x1xf32>
    %91 = vector.extract %90[0, 0, 0] : f32 from vector<1x1x1xf32>
    %92 = vector.broadcast %91 : f32 to vector<1x1xf32>
    %cst_42 = arith.constant 2.047000e+03 : f32
    %93 = vector.broadcast %cst_42 : f32 to vector<1x1xf32>
    %94 = arith.divf %92, %93 : vector<1x1xf32>
    %95 = math.sqrt %94 : vector<1x1xf32>
    %cst_43 = arith.constant 1.000000e+00 : f32
    %96 = vector.broadcast %cst_43 : f32 to vector<1x1xf32>
    %97 = arith.mulf %95, %96 : vector<1x1xf32>
    %98 = vector.broadcast %97 : vector<1x1xf32> to vector<64x32xf32>
    %99 = arith.mulf %98, %75 : vector<64x32xf32>
    %100 = arith.addf %16, %99 : vector<64x32xf32>
    %101 = tpu.concatenate %100, %73 in 0 : vector<64x32xf32>, vector<64x32xf32> -> vector<128x32xf32>
    %102 = arith.truncf %101 : vector<128x32xf32> to vector<128x32xbf16>
    %c0_44 = arith.constant 0 : index
    %c0_45 = arith.constant 0 : index
    %103 = vector.load %arg9[%c0_44, %c0_45] : memref<32x16xbf16, #tpu.memory_space<vmem>>, vector<32x16xbf16>
    %cst_46 = arith.constant dense<0.000000e+00> : vector<128x16xf32>
    %104 = tpu.matmul %102, %103, %cst_46 {dimension_numbers = #tpu.dot_dimension_numbers<[1], [0], [0], [1], [0, 0, 1, 1], [], []>} : vector<128x32xbf16>, vector<32x16xbf16>, vector<128x16xf32> -> vector<128x16xf32>
    %c0_47 = arith.constant 0 : index
    %c0_48 = arith.constant 0 : index
    %105 = vector.load %arg10[%c0_47, %c0_48] : memref<1x16xf32, #tpu.memory_space<vmem>>, vector<1x16xf32>
    %106 = vector.broadcast %105 : vector<1x16xf32> to vector<128x16xf32>
    %107 = arith.addf %104, %106 : vector<128x16xf32>
    %108 = vector.extract_strided_slice %107 {offsets = [0, 0], sizes = [64, 16], strides = [1, 1]} : vector<128x16xf32> to vector<64x16xf32>
    %109 = vector.extract_strided_slice %107 {offsets = [64, 0], sizes = [64, 16], strides = [1, 1]} : vector<128x16xf32> to vector<64x16xf32>
    %110 = tpu.concatenate %108, %109 in 1 : vector<64x16xf32>, vector<64x16xf32> -> vector<64x32xf32>
    %111 = arith.truncf %110 : vector<64x32xf32> to vector<64x32xbf16>
    %cst_49 = arith.constant dense<0.000000e+00> : vector<128x32xf32>
    %112 = tpu.matmul %0, %111, %cst_49 {dimension_numbers = #tpu.dot_dimension_numbers<[1], [0], [0], [1], [0, 0, 1, 1], [], []>} : vector<128x64xbf16>, vector<64x32xbf16>, vector<128x32xf32> -> vector<128x32xf32>
    %113 = vector.extract_strided_slice %112 {offsets = [0, 0], sizes = [64, 16], strides = [1, 1]} : vector<128x32xf32> to vector<64x16xf32>
    %114 = vector.extract_strided_slice %112 {offsets = [0, 16], sizes = [64, 16], strides = [1, 1]} : vector<128x32xf32> to vector<64x16xf32>
    %115 = vector.extract_strided_slice %112 {offsets = [64, 0], sizes = [64, 16], strides = [1, 1]} : vector<128x32xf32> to vector<64x16xf32>
    %116 = vector.extract_strided_slice %112 {offsets = [64, 16], sizes = [64, 16], strides = [1, 1]} : vector<128x32xf32> to vector<64x16xf32>
    %117 = arith.addf %113, %114 : vector<64x16xf32>
    %cst_50 = arith.constant 0.000000e+00 : f32
    %118 = vector.broadcast %cst_50 : f32 to vector<64x16xf32>
    %119 = arith.cmpf oge, %115, %118 : vector<64x16xf32>
    %cst_51 = arith.constant 1.000000e+00 : f32
    %cst_52 = arith.constant 5.000000e-01 : f32
    %120 = vector.broadcast %cst_51 : f32 to vector<64x16xf32>
    %121 = vector.broadcast %cst_52 : f32 to vector<64x16xf32>
    %122 = arith.select %119, %120, %121 : vector<64x16xi1>, vector<64x16xf32>
    %123 = arith.mulf %122, %115 : vector<64x16xf32>
    %124 = arith.addf %117, %123 : vector<64x16xf32>
    %cst_53 = arith.constant 0.000000e+00 : f32
    %125 = vector.broadcast %cst_53 : f32 to vector<64x16xf32>
    %126 = arith.cmpf oge, %116, %125 : vector<64x16xf32>
    %cst_54 = arith.constant 1.000000e+00 : f32
    %cst_55 = arith.constant 5.000000e-01 : f32
    %127 = vector.broadcast %cst_54 : f32 to vector<64x16xf32>
    %128 = vector.broadcast %cst_55 : f32 to vector<64x16xf32>
    %129 = arith.select %126, %127, %128 : vector<64x16xi1>, vector<64x16xf32>
    %130 = arith.mulf %129, %116 : vector<64x16xf32>
    %131 = arith.addf %124, %130 : vector<64x16xf32>
    %c0_56 = arith.constant 0 : index
    %c0_57 = arith.constant 0 : index
    %c0_58 = arith.constant 0 : index
    %132 = vector.load %arg13[%c0_56, %c0_57, %c0_58] : memref<1x64x16xf32, #tpu.memory_space<vmem>>, vector<1x64x16xf32>
    %133 = vector.shape_cast %132 : vector<1x64x16xf32> to vector<64x16xf32>
    %134 = vector.shape_cast %131 : vector<64x16xf32> to vector<1x64x16xf32>
    tpu.vector_store %arg13[%c0_56, %c0_57, %c0_58], %134 {strides = array<i32>} : memref<1x64x16xf32, #tpu.memory_space<vmem>>, vector<1x64x16xf32>,
    return
  }
  func.func @transform_0(%arg0: i32) -> (i32, i32) {
    %c0_i32 = arith.constant 0 : i32
    %c0_i32_0 = arith.constant 0 : i32
    %c0_i32_1 = arith.constant 0 : i32
    return %c0_i32, %c0_i32_0 : i32, i32
  }
  func.func @transform_1(%arg0: i32) -> (i32, i32, i32) {
    %c0_i32 = arith.constant 0 : i32
    %c0_i32_0 = arith.constant 0 : i32
    %c0_i32_1 = arith.constant 0 : i32
    return %arg0, %c0_i32, %c0_i32_0 : i32, i32, i32
  }
  func.func @transform_2(%arg0: i32) -> (i32, i32) {
    %c0_i32 = arith.constant 0 : i32
    %c0_i32_0 = arith.constant 0 : i32
    %c0_i32_1 = arith.constant 0 : i32
    return %c0_i32, %c0_i32_0 : i32, i32
  }
  func.func @transform_3(%arg0: i32) -> (i32, i32) {
    %c0_i32 = arith.constant 0 : i32
    %c0_i32_0 = arith.constant 0 : i32
    %c0_i32_1 = arith.constant 0 : i32
    return %c0_i32, %c0_i32_0 : i32, i32
  }
  func.func @transform_4(%arg0: i32) -> (i32, i32) {
    %c0_i32 = arith.constant 0 : i32
    %c0_i32_0 = arith.constant 0 : i32
    %c0_i32_1 = arith.constant 0 : i32
    return %c0_i32, %c0_i32_0 : i32, i32
  }
  func.func @transform_5(%arg0: i32) -> (i32, i32) {
    %c0_i32 = arith.constant 0 : i32
    %c0_i32_0 = arith.constant 0 : i32
    %c0_i32_1 = arith.constant 0 : i32
    return %c0_i32, %c0_i32_0 : i32, i32
  }
  func.func @transform_6(%arg0: i32) -> (i32, i32) {
    %c0_i32 = arith.constant 0 : i32
    %c0_i32_0 = arith.constant 0 : i32
    %c0_i32_1 = arith.constant 0 : i32
    return %c0_i32, %c0_i32_0 : i32, i32
  }
  func.func @transform_7(%arg0: i32) -> (i32, i32) {
    %c0_i32 = arith.constant 0 : i32
    %c0_i32_0 = arith.constant 0 : i32
    %c0_i32_1 = arith.constant 0 : i32
    return %c0_i32, %c0_i32_0 : i32, i32
  }
  func.func @transform_8(%arg0: i32) -> (i32, i32) {
    %c0_i32 = arith.constant 0 : i32
    %c0_i32_0 = arith.constant 0 : i32
    %c0_i32_1 = arith.constant 0 : i32
    return %c0_i32, %c0_i32_0 : i32, i32
  }
  func.func @transform_9(%arg0: i32) -> (i32, i32) {
    %c0_i32 = arith.constant 0 : i32
    %c0_i32_0 = arith.constant 0 : i32
    %c0_i32_1 = arith.constant 0 : i32
    return %c0_i32, %c0_i32_0 : i32, i32
  }
  func.func @transform_10(%arg0: i32) -> (i32, i32, i32) {
    %c0_i32 = arith.constant 0 : i32
    %c0_i32_0 = arith.constant 0 : i32
    %c0_i32_1 = arith.constant 0 : i32
    return %arg0, %c0_i32, %c0_i32_0 : i32, i32, i32
  }
  func.func @transform_11(%arg0: i32) -> (i32, i32, i32) {
    %c0_i32 = arith.constant 0 : i32
    %c0_i32_0 = arith.constant 0 : i32
    %c0_i32_1 = arith.constant 0 : i32
    return %arg0, %c0_i32, %c0_i32_0 : i32, i32, i32
  }
  func.func @transform_12(%arg0: i32) -> (i32, i32, i32) {
    %c0_i32 = arith.constant 0 : i32
    %c0_i32_0 = arith.constant 0 : i32
    %c0_i32_1 = arith.constant 0 : i32
    return %arg0, %c0_i32, %c0_i32_0 : i32, i32, i32
  }
}

</mosaic_0001>

<bundles_post_ra>
// kernel: tpu_custom_call.1
= control target key start
LH: loop header
LB: loop body
LE: loop exit
PB: predicated region body
PF: predicated region fallthrough
CT: control target
= control target key end

     0   :  { %s2281_s21 = smov 0   ;;  %s2707_s0 = inlined_call_operand.vmem [shape: bf16[128,64], index: 0, kind: input, shape index: {}]   ;;  %s2708_s1 = inlined_call_operand.vmem [shape: f32[4,64,16], index: 1, kind: input, shape index: {}]   ;;  %s2709_s2 = inlined_call_operand.vmem [shape: bf16[16,32], index: 2, kind: input, shape index: {}]   ;;  %s2710_s3 = inlined_call_operand.vmem [shape: f32[1,32], index: 3, kind: input, shape index: {}]   ;;  %s2711_s4 = inlined_call_operand.vmem [shape: bf16[32,32], index: 4, kind: input, shape index: {}]   ;;  %s2712_s5 = inlined_call_operand.vmem [shape: f32[1,32], index: 5, kind: input, shape index: {}]   ;;  %s2713_s6 = inlined_call_operand.vmem [shape: bf16[32,32], index: 6, kind: input, shape index: {}]   ;;  %s2714_s7 = inlined_call_operand.vmem [shape: f32[1,32], index: 7, kind: input, shape index: {}]   ;;  %s2715_s8 = inlined_call_operand.vmem [shape: bf16[32,16], index: 8, kind: input, shape index: {}]   ;;  %s2716_s9 = inlined_call_operand.vmem [shape: f32[1,16], index: 9, kind: input, shape index: {}]   ;;  %s2717_s10 = inlined_call_operand.vmem [shape: f32[4,64,32], index: 10, kind: input, shape index: {}]   ;;  %s2718_s11 = inlined_call_operand.vmem [shape: f32[4,64,32], index: 11, kind: input, shape index: {}]   ;;  %s2719_s12 = inlined_call_operand.vmem [shape: f32[4,64,16], index: 12, kind: output, shape index: {}]  }
   0x1 LB: > { %s1861_s22 = sadd.s32 4294967295, %s2211_s21   ;;  %p1865_p0 = scmp.ge.s32.totalorder %s2211_s21, 1  ;;  %s2211_s21 = sphi %s2281_s21, %s22_s21  }
   0x2   : > { %p382_p1 = scmp.lt.s32.totalorder %s2211_s21, 5 }
   0x4   : > { %p383_p2 = pnand %p1865_p0, %p382_p1 }
   0x5   : > { %p434_p3 = scmp.lt.s32.totalorder (!%p383_p2), %s1861_s22, 3  ;;  %v2292_v0 = vld [vmem:[%s2707_s0] sm:$0xff] (!%p383_p2)   ;;  %vm503_vm0 = vcmask (!%p383_p2), 523264   ;;  %v2305_v13 = vld [vmem:[%s2707_s0 + $0x8] sm:$0xff] (!%p383_p2)   ;;  %v2310_v14 = vld [vmem:[%s2707_s0 + $0x10] sm:$0xff] (!%p383_p2)   ;;  %vm600_vm1 = vcmask (!%p383_p2), 130048  }
   0x6   : > { %386 = sbr.rel (%p383_p2) target bundleno = 2595 (0xa23), region = 68  ;;  %2018 = vmatprep.mubr.msk.bf16.mxu0 (!%p383_p2), %vm503_vm0, %v2292_v0  ;;  %v2319_v15 = vld [vmem:[%s2707_s0 + $0x18] sm:$0xff] (!%p383_p2)   ;;  %v2187_v16 = vld [vmem:[%s2709_s2] sm:$0xff] (!%p383_p2)   ;;  %v2189_v30 = vld [vmem:[%s2711_s4 + $0x8] sm:$0xff] (!%p383_p2)   ;;  %vm722_vm5 = vcmask (!%p383_p2), 261120  }
   0x7   : > { %2026 = vmatprep.subr.bf16.mxu1 (!%p383_p2), %v2187_v16  ;;  %v2188_v29 = vld [vmem:[%s2711_s4] sm:$0xff] (!%p383_p2)  }
   0x8   : > { %2027 = vmatpush3.bf16.msra.mxu1 (!%p383_p2), %v2187_v16  ;;  %v1882_v31 = vld [vmem:[%s2710_s3] ss:$0 sm:$0xff] (!%p383_p2) }
   0x9   : > { %2036 = vmatprep.subr.bf16.mxu1 (!%p383_p2), %v2188_v29 }
   0xd   : > { %s2721_s22 = smov (!%p434_p3, %s1861_s22), 3 }
   0xe   : > { %s2296_s25 = sshll.u32 %s2721_s22, 6 }
   0xf   : > { %s438_s28 = scalar_lea.vmem %s2708_s1, %s2296_s25  ;;  %s2464_s20 = scalar_lea.vmem %s2717_s10, %s2296_s25 }
  0x10   : > { %v471_v1 = vld [vmem:[%s438_s28] sm:$0xff]  ;;  %v472_v2 = vld [vmem:[%s438_s28 + $0x8] sm:$0xff]  ;;  %v473_v3 = vld [vmem:[%s438_s28 + $0x10] sm:$0xff]  ;;  %s2505_s14 = scalar_lea.vmem %s2718_s11, %s2296_s25  ;;  %s2681_s19 = scalar_lea.vmem %s2719_s12, %s2296_s25 }
  0x11   : > { %v479_v4 = vpack.c.bf16 %v472_v2, %v471_v1  ;;  %v474_v5 = vld [vmem:[%s438_s28 + $0x18] sm:$0xff]  ;;  %v475_v7 = vld [vmem:[%s438_s28 + $0x20] sm:$0xff]  ;;  %v476_v8 = vld [vmem:[%s438_s28 + $0x28] sm:$0xff] }
  0x12   : > { %v480_v6 = vpack.c.bf16 %v474_v5, %v473_v3  ;;  %v477_v9 = vld [vmem:[%s438_s28 + $0x30] sm:$0xff]  ;;  %v478_v10 = vld [vmem:[%s438_s28 + $0x38] sm:$0xff]  ;;  %v481_v11 = vpack.c.bf16 %v476_v8, %v475_v7 }
  0x13   : > { %2010 = vmatprep.subr.bf16.mxu0 %v479_v4  ;;  %v482_v12 = vpack.c.bf16 %v478_v10, %v477_v9 }
  0x14   : > { %2011 = vmatpush3.bf16.msra.mxu0 %v479_v4 }
  0x15   : > { %2012 = vmatprep.subr.bf16.mxu0 %v480_v6 }
  0x18   : > { %2013 = vmatpush3.bf16.msra.mxu0 %v480_v6 }
  0x19   : > { %2014 = vmatprep.subr.bf16.mxu0 %v481_v11 }
  0x1c   : > { %2015 = vmatpush3.bf16.msra.mxu0 %v481_v11 }
  0x1d   : > { %2016 = vmatprep.subr.bf16.mxu0 %v482_v12 }
  0x20   : > { %2017 = vmatpush3.bf16.msra.mxu0 %v482_v12 }
  0x23   : > { %2019 = vmatmul.mubr.msk.bf16.vlgmr.msra.gmra.mrb[0].mxu0 %vm503_vm0, %v2305_v13 }
  0x24   : > { %2022 = vmatprep.mubr.msk.bf16.mxu0 %vm503_vm0, %v2310_v14 }
  0x2b   : > { %2023 = vmatmul.mubr.msk.bf16.gmra.mrb[4].mxu0 %vm503_vm0, %v2319_v15 }
  0x2c   : > { %2084 = vmatprep.mubr.msk.bf16.mxu0 %vm503_vm0, %v2292_v0 }
  0xf6   : > { %v2020_v17 = vpop.f32.mrb[0].mxu0 }
  0xf7   : > { %v550_v18 = vpop.f32.mrb[1].mxu0 }
  0xf8   : > { %v2021_v19 = vpop.f32.mrb[2].mxu0 }
  0xf9   : > { %v582_v20 = vpack.c.bf16 %v2021_v19, %v2020_v17  ;;  %v553_v21 = vpop.f32.mrb[3].mxu0 }
  0xfa   : > { %v581_v22 = vpack.c.bf16 %v553_v21, %v550_v18 }
  0xfc   : > { %2028 = vmatprep.mubr.msk.bf16.mxu1 %vm600_vm1, %v581_v22 }
  0xfd   : > { %2029 = vmatmul.mubr.msk.bf16.vlgmr.msra.gmra.mrb[0].mxu1 %vm600_vm1, %v582_v20 }
  0xfe   : > { %v2024_v23 = vpop.f32.mrb[4].mxu0  ;;  %2037 = vmatpush3.bf16.msra.mxu1 %v2188_v29 }
  0xff   : > { %v566_v24 = vpop.f32.mrb[5].mxu0  ;;  %2038 = vmatprep.subr.bf16.mxu1 %v2189_v30 }
 0x100   : > { %v2025_v25 = vpop.f32.mrb[6].mxu0 }
 0x101   : > { %v584_v26 = vpack.c.bf16 %v2025_v25, %v2024_v23  ;;  %v569_v27 = vpop.f32.mrb[7].mxu0 }
 0x102   : > { %v583_v28 = vpack.c.bf16 %v569_v27, %v566_v24  ;;  %2039 = vmatpush3.bf16.msra.mxu1 %v2189_v30 }
 0x104   : > { %2032 = vmatprep.mubr.msk.bf16.mxu1 %vm600_vm1, %v583_v28 }
 0x105   : > { %2033 = vmatmul.mubr.msk.bf16.gmra.mrb[4].mxu1 %vm600_vm1, %v584_v26 }
 0x1d0   : > { %v2030_v32 = vpop.f32.mrb[0].mxu1 }
 0x1d1   : > { %v656_v33 = vadd.f32 %v2030_v32, %v1882_v31  ;;  %v647_v34 = vpop.f32.mrb[1].mxu1 }
 0x1d2   : > { %v648_v35 = vadd.f32 %v1882_v31, %v647_v34  ;;  %v2031_v36 = vpop.f32.mrb[2].mxu1 }
 0x1d3   : > { %v659_v37 = vadd.f32 %v2031_v36, %v1882_v31  ;;  %v650_v38 = vpop.f32.mrb[3].mxu1  ;;  %v688_v39 = vmul.f32 0.25, %v656_v33  ;;  %vm680_vm3 = vcmp.gt.f32.partialorder %v656_v33, 0.0 }
 0x1d4   : > { %vm678_vm2 = vcmp.gt.f32.partialorder %v648_v35, 0.0  ;;  %v686_v40 = vmul.f32 0.25, %v648_v35  ;;  %v651_v41 = vadd.f32 %v1882_v31, %v650_v38 }
 0x1d5   : > { %vm681_vm4 = vcmp.gt.f32.partialorder %v659_v37, 0.0  ;;  %v689_v42 = vmul.f32 0.25, %v659_v37  ;;  %v2345_v46 = vsel %vm680_vm3, %v656_v33, %v688_v39 }
 0x1d6   : > { %v2341_v43 = vsel %vm678_vm2, %v648_v35, %v686_v40  ;;  %vm679_vm6 = vcmp.gt.f32.partialorder %v651_v41, 0.0  ;;  %v687_v44 = vmul.f32 0.25, %v651_v41  ;;  %v1281_v58 = vsel %vm722_vm5, %v2345_v46, 0.0  ;;  %v1894_v35 = vld [vmem:[%s2712_s5] ss:$0 sm:$0xff] }
 0x1d7   : > { %v2343_v45 = vsel %vm681_vm4, %v659_v37, %v689_v42  ;;  %v1278_v49 = vsel %vm722_vm5, %v2341_v43, 0.0 }
 0x1d8   : > { %v2347_v47 = vsel %vm679_vm6, %v651_v41, %v687_v44  ;;  %v2034_v48 = vpop.f32.mrb[4].mxu1  ;;  %v703_v54 = vpack.c.bf16 %v2343_v45, %v2345_v46  ;;  %v1283_v3 = vsel %vm722_vm5, %v2343_v45, 0.0 }
 0x1d9   : > { %v1279_v50 = vsel %vm722_vm5, %v2347_v47, 0.0  ;;  %v672_v51 = vadd.f32 %v2034_v48, %v1882_v31  ;;  %v663_v52 = vpop.f32.mrb[5].mxu1  ;;  %v702_v53 = vpack.c.bf16 %v2347_v47, %v2341_v43 }
 0x1da   : > { %v1280_v55 = vadd.f32 %v1279_v50, %v1278_v49  ;;  %v664_v56 = vadd.f32 %v1882_v31, %v663_v52  ;;  %v2035_v57 = vpop.f32.mrb[6].mxu1 }
 0x1db   : > { %v692_v59 = vmul.f32 0.25, %v672_v51  ;;  %v675_v60 = vadd.f32 %v2035_v57, %v1882_v31  ;;  %v666_v61 = vpop.f32.mrb[7].mxu1  ;;  %2040 = vmatprep.mubr.msk.bf16.mxu1 %vm722_vm5, %v702_v53  ;;  %vm684_vm8 = vcmp.gt.f32.partialorder %v672_v51, 0.0 }
 0x1dc   : > { %vm682_vm7 = vcmp.gt.f32.partialorder %v664_v56, 0.0  ;;  %v690_v62 = vmul.f32 0.25, %v664_v56  ;;  %v667_v63 = vadd.f32 %v1882_v31, %v666_v61  ;;  %2041 = vmatmul.mubr.msk.bf16.vlgmr.msra.gmra.mrb[8].mxu1 %vm722_vm5, %v703_v54  ;;  %v1282_v1 = vadd.f32 %v1281_v58, %v1280_v55 }
 0x1dd   : > { %vm685_vm9 = vcmp.gt.f32.partialorder %v675_v60, 0.0  ;;  %v693_v2 = vmul.f32 0.25, %v675_v60  ;;  %v2369_v9 = vsel %vm684_vm8, %v672_v51, %v692_v59 }
 0x1de   : > { %v2363_v4 = vsel %vm682_vm7, %v664_v56, %v690_v62  ;;  %vm683_vm10 = vcmp.gt.f32.partialorder %v667_v63, 0.0  ;;  %v691_v5 = vmul.f32 0.25, %v667_v63  ;;  %v1284_v6 = vadd.f32 %v1283_v3, %v1282_v1 }
 0x1df   : > { %v2365_v7 = vsel %vm685_vm9, %v675_v60, %v693_v2  ;;  %v1285_v8 = vsel %vm722_vm5, %v2363_v4, 0.0  ;;  %v1289_v19 = vsel %vm722_vm5, %v2369_v9, 0.0 }
 0x1e0   : > { %v2371_v10 = vsel %vm683_vm10, %v667_v63, %v691_v5  ;;  %v1286_v11 = vadd.f32 %v1285_v8, %v1284_v6  ;;  %v705_v17 = vpack.c.bf16 %v2365_v7, %v2369_v9  ;;  %v1291_v21 = vsel %vm722_vm5, %v2365_v7, 0.0 }
 0x1e1   : > { %v704_v12 = vpack.c.bf16 %v2371_v10, %v2363_v4  ;;  %v1287_v16 = vsel %vm722_vm5, %v2371_v10, 0.0 }
 0x1e2   : > { %v1288_v18 = vadd.f32 %v1287_v16, %v1286_v11 }
 0x1e3   : > { %2044 = vmatprep.mubr.msk.bf16.mxu1 %vm722_vm5, %v704_v12 }
 0x1e4   : > { %2045 = vmatmul.mubr.msk.bf16.gmra.mrb[12].mxu1 %vm722_vm5, %v705_v17  ;;  %v1290_v20 = vadd.f32 %v1289_v19, %v1288_v18 }
 0x1e5   : > { %2056 = vmatprep.mubr.msk.bf16.mxu1 %vm503_vm0, %v2292_v0 }
 0x1e6   : > { %v1292_v22 = vadd.f32 %v1291_v21, %v1290_v20 }
 0x1e8   : > { %1293 = vadd.xlane.f32.xlu1 %v1292_v22 }
 0x2af   : > { %v2042_v23 = vpop.f32.mrb[8].mxu1 }
 0x2b0   : > { %v769_v24 = vpop.f32.mrb[9].mxu1 }
 0x2b1   : > { %v2043_v25 = vpop.f32.mrb[10].mxu1 }
 0x2b2   : > { %v801_v26 = vpack.c.bf16 %v2043_v25, %v2042_v23  ;;  %v772_v27 = vpop.f32.mrb[11].mxu1 }
 0x2b3   : > { %v800_v28 = vpack.c.bf16 %v772_v27, %v769_v24 }
 0x2b5   : > { %2048 = vmatprep.subr.bf16.mxu1 %v800_v28 }
 0x2b6   : > { %2049 = vmatpush3.bf16.msra.mxu1 %v800_v28 }
 0x2b7   : > { %v2046_v29 = vpop.f32.mrb[12].mxu1  ;;  %2050 = vmatprep.subr.bf16.mxu1 %v801_v26 }
 0x2b8   : > { %v785_v30 = vpop.f32.mrb[13].mxu1 }
 0x2b9   : > { %v2047_v31 = vpop.f32.mrb[14].mxu1 }
 0x2ba   : > { %v803_v32 = vpack.c.bf16 %v2047_v31, %v2046_v29  ;;  %v788_v33 = vpop.f32.mrb[15].mxu1  ;;  %2051 = vmatpush3.bf16.msra.mxu1 %v801_v26 }
 0x2bb   : > { %v802_v34 = vpack.c.bf16 %v788_v33, %v785_v30 }
 0x2bd   : > { %2052 = vmatprep.subr.bf16.mxu1 %v802_v34 }
 0x2be   : > { %2053 = vmatpush3.bf16.msra.mxu1 %v802_v34 }
 0x2bf   : > { %2054 = vmatprep.subr.bf16.mxu1 %v803_v32 }
 0x2c2   : > { %2055 = vmatpush3.bf16.msra.mxu1 %v803_v32 }
 0x2c5   : > { %2057 = vmatmul.mubr.msk.bf16.vlgmr.msra.gmra.mrb[16].mxu1 %vm503_vm0, %v2305_v13 }
 0x2c6   : > { %2060 = vmatprep.mubr.msk.bf16.mxu1 %vm503_vm0, %v2310_v14 }
 0x2cd   : > { %2061 = vmatmul.mubr.msk.bf16.gmra.mrb[20].mxu1 %vm503_vm0, %v2319_v15 }
 0x398   : > { %v2058_v36 = vpop.f32.mrb[16].mxu1 }
 0x399   : > { %v845_v37 = vpop.f32.mrb[17].mxu1  ;;  %v2398_v41 = vadd.f32 %v2058_v36, %v1894_v35 }
 0x39a   : > { %v2396_v38 = vadd.f32 %v1894_v35, %v845_v37  ;;  %v2059_v39 = vpop.f32.mrb[18].mxu1 }
 0x39b   : > { %v848_v40 = vpop.f32.mrb[19].mxu1  ;;  %v2404_v48 = vadd.f32 %v2059_v39, %v1894_v35  ;;  %v887_v51 = vsel %vm722_vm5, %v2398_v41, 0.0 }
 0x39c   : > { %v2400_v42 = vadd.f32 %v1894_v35, %v848_v40  ;;  %v884_v44 = vsel %vm722_vm5, %v2396_v38, 0.0 }
 0x39d   : > { %v889_v55 = vsel %vm722_vm5, %v2404_v48, 0.0 }
 0x39e   : > { %v885_v49 = vsel %vm722_vm5, %v2400_v42, 0.0 }
 0x39f   : > { %v886_v50 = vadd.f32 %v885_v49, %v884_v44 }
 0x3a0   : > { %v2062_v52 = vpop.f32.mrb[20].mxu1 }
 0x3a1   : > { %v888_v53 = vadd.f32 %v887_v51, %v886_v50  ;;  %v861_v54 = vpop.f32.mrb[21].mxu1  ;;  %v2414_v60 = vadd.f32 %v2062_v52, %v1894_v35 }
 0x3a2   : > { %v2412_v56 = vadd.f32 %v1894_v35, %v861_v54  ;;  %v2063_v57 = vpop.f32.mrb[22].mxu1 }
 0x3a3   : > { %v864_v58 = vpop.f32.mrb[23].mxu1  ;;  %v890_v59 = vadd.f32 %v889_v55, %v888_v53  ;;  %v2420_v1 = vadd.f32 %v2063_v57, %v1894_v35  ;;  %v895_v5 = vsel %vm722_vm5, %v2414_v60, 0.0 }
 0x3a4   : > { %v891_v61 = vsel %vm722_vm5, %v2412_v56, 0.0  ;;  %v2418_v62 = vadd.f32 %v1894_v35, %v864_v58 }
 0x3a5   : > { %v892_v63 = vadd.f32 %v891_v61, %v890_v59  ;;  %v897_v8 = vsel %vm722_vm5, %v2420_v1, 0.0 }
 0x3a6   : > { %v893_v2 = vsel %vm722_vm5, %v2418_v62, 0.0 }
 0x3a7   : > { %v894_v3 = vadd.f32 %v893_v2, %v892_v63 }
 0x3a9   : > { %v896_v6 = vadd.f32 %v895_v5, %v894_v3  ;;  %v2190_v5 = vld [vmem:[%s2713_s6] sm:$0xff]  }
 0x3aa   : > { %2064 = vmatprep.subr.bf16.mxu1 %v2190_v5 }
 0x3ab   : > { %v898_v11 = vadd.f32 %v897_v8, %v896_v6  ;;  %v2191_v6 = vld [vmem:[%s2713_s6 + $0x8] sm:$0xff]   ;;  %2065 = vmatpush3.bf16.msra.mxu1 %v2190_v5  ;;  %v1294_v8 = vpop.xlane.xlu1 %1293 }
 0x3ac   : > { %2066 = vmatprep.subr.bf16.mxu1 %v2191_v6 }
 0x3ad   : > { %899 = vadd.xlane.f32.xlu0 %v898_v11  ;;  %v1295_v11 = vrot.slane %v1294_v8, 4 }
 0x3af   : > { %2067 = vmatpush3.bf16.msra.mxu1 %v2191_v6  ;;  %v876_v6 = vld [vmem:[%s2464_s20] sm:$0xff] }
 0x43a   : > { %v900_v12 = vpop.xlane.xlu0 %899 }
 0x43b   : > { %v901_v16 = vrot.slane %v900_v12, 4 }
 0x43d   : > { %v902_v17 = vadd.f32 %v901_v16, %v900_v12  ;;  %v1296_v12 = vadd.f32 %v1295_v11, %v1294_v8 }
 0x43f   : > { %v903_v18 = vrot.slane %v902_v17, 2  ;;  %v1297_v16 = vrot.slane %v1296_v12, 2 }
 0x441   : > { %v904_v19 = vadd.f32 %v903_v18, %v902_v17 }
 0x443   : > { %v905_v20 = vrot.slane %v904_v19, 1 }
 0x445   : > { %v906_v21 = vadd.f32 %v905_v20, %v904_v19  ;;  %v1298_v20 = vadd.f32 %v1297_v16, %v1296_v12  ;;  %v877_v16 = vld [vmem:[%s2464_s20 + $0x8] sm:$0xff] }
 0x447   : > { %2144 = vpush %v906_v21 }
 0x478   : > { %s2145_s29 = spop %2144 }
 0x479   : > { %v908_v22 = vstv %s2145_s29 }
 0x47a   : > { %v910_v23 = vmul.f32 0.00048828125, %v908_v22 }
 0x47c   : > { %v911_v24 = vsub.f32 %v2396_v38, %v910_v23  ;;  %v912_v25 = vsub.f32 %v2400_v42, %v910_v23  ;;  %v913_v26 = vsub.f32 %v2398_v41, %v910_v23  ;;  %v914_v27 = vsub.f32 %v2404_v48, %v910_v23 }
 0x47d   : > { %v915_v28 = vsub.f32 %v2412_v56, %v910_v23  ;;  %v916_v32 = vsub.f32 %v2418_v62, %v910_v23  ;;  %v917_v37 = vsub.f32 %v2414_v60, %v910_v23  ;;  %v918_v49 = vsub.f32 %v2420_v1, %v910_v23 }
 0x47e   : > { %v919_v29 = vmul.f32 %v911_v24, %v911_v24  ;;  %v920_v30 = vmul.f32 %v912_v25, %v912_v25  ;;  %v921_v31 = vmul.f32 %v913_v26, %v913_v26  ;;  %v922_v33 = vmul.f32 %v914_v27, %v914_v27 }
 0x47f   : > { %v923_v39 = vmul.f32 %v915_v28, %v915_v28  ;;  %v924_v50 = vmul.f32 %v916_v32, %v916_v32  ;;  %v925_v53 = vmul.f32 %v917_v37, %v917_v37  ;;  %v926_v57 = vmul.f32 %v918_v49, %v918_v49 }
 0x480   : > { %v927_v34 = vsel %vm722_vm5, %v919_v29, 0.0  ;;  %v928_v35 = vsel %vm722_vm5, %v920_v30, 0.0  ;;  %v930_v40 = vsel %vm722_vm5, %v921_v31, 0.0  ;;  %v932_v51 = vsel %vm722_vm5, %v922_v33, 0.0 }
 0x481   : > { %v929_v36 = vadd.f32 %v928_v35, %v927_v34  ;;  %v934_v54 = vsel %vm722_vm5, %v923_v39, 0.0  ;;  %v936_v58 = vsel %vm722_vm5, %v924_v50, 0.0  ;;  %v938_v61 = vsel %vm722_vm5, %v925_v53, 0.0 }
 0x482   : > { %v940_v2 = vsel %vm722_vm5, %v926_v57, 0.0  ;;  %v1299_v23 = vrot.slane %v1298_v20, 1 }
 0x483   : > { %v931_v44 = vadd.f32 %v930_v40, %v929_v36 }
 0x484   : > { %v1300_v26 = vadd.f32 %v1299_v23, %v1298_v20 }
 0x485   : > { %v933_v52 = vadd.f32 %v932_v51, %v931_v44 }
 0x487   : > { %v935_v55 = vadd.f32 %v934_v54, %v933_v52 }
 0x489   : > { %v937_v59 = vadd.f32 %v936_v58, %v935_v55 }
 0x48b   : > { %v939_v63 = vadd.f32 %v938_v61, %v937_v59 }
 0x48d   : > { %v941_v3 = vadd.f32 %v940_v2, %v939_v63 }
 0x48f   : > { %942 = vadd.xlane.f32.xlu0 %v941_v3 }
 0x51c   : > { %v943_v17 = vpop.xlane.xlu0 %942 }
 0x51d   : > { %v944_v18 = vrot.slane %v943_v17, 4 }
 0x51f   : > { %v945_v19 = vadd.f32 %v944_v18, %v943_v17  ;;  %v878_v17 = vld [vmem:[%s2464_s20 + $0x10] sm:$0xff]  ;;  %v879_v18 = vld [vmem:[%s2464_s20 + $0x18] sm:$0xff] }
 0x521   : > { %v946_v21 = vrot.slane %v945_v19, 2 }
 0x523   : > { %v947_v22 = vadd.f32 %v946_v21, %v945_v19  ;;  %v880_v21 = vld [vmem:[%s2464_s20 + $0x20] sm:$0xff] }
 0x525   : > { %v948_v24 = vrot.slane %v947_v22, 1 }
 0x527   : > { %v949_v25 = vadd.f32 %v948_v24, %v947_v22  ;;  %v881_v22 = vld [vmem:[%s2464_s20 + $0x28] sm:$0xff] }
 0x529   : > { %2146 = vpush %v949_v25 }
 0x52a   : > { %2148 = vpush %v1300_v26 }
 0x55a   : > { %s2147_s16 = spop %2146 }
 0x55b   : > { %v951_v27 = vstv %s2147_s16  ;;  %s2149_s17 = spop %2148  ;;  %s2215_s16 = smov 112  }
 0x55c   : > { %v953_v28 = vmul.f32 0.0004885198, %v951_v27  ;;  %v1302_v29 = vstv %s2149_s17 }
 0x55d   : > { %v1303_v30 = vmul.f32 0.00048828125, %v1302_v29 }
 0x55e   : > { %2198 = vrsqrt.f32 %v953_v28  ;;  %vm956_vm11 = vcmp.eq.f32.partialorder %v953_v28, inf  ;;  %v959_v8 = vand.u32 2147483648, %v953_v28  ;;  %vm958_vm12 = vcmp.eq.f32.partialorder %v953_v28, 0.0 }
 0x55f   : > { %v1304_v31 = vsub.f32 %v2341_v43, %v1303_v30  ;;  %v1305_v32 = vsub.f32 %v2347_v47, %v1303_v30  ;;  %v1306_v33 = vsub.f32 %v2345_v46, %v1303_v30  ;;  %v1307_v34 = vsub.f32 %v2343_v45, %v1303_v30 }
 0x560   : > { %v1308_v35 = vsub.f32 %v2363_v4, %v1303_v30  ;;  %v1309_v40 = vsub.f32 %v2371_v10, %v1303_v30  ;;  %v1310_v51 = vsub.f32 %v2369_v9, %v1303_v30  ;;  %v1311_v55 = vsub.f32 %v2365_v7, %v1303_v30 }
 0x561   : > { %v1312_v36 = vmul.f32 %v1304_v31, %v1304_v31  ;;  %v1313_v37 = vmul.f32 %v1305_v32, %v1305_v32  ;;  %v1314_v39 = vmul.f32 %v1306_v33, %v1306_v33  ;;  %v1315_v44 = vmul.f32 %v1307_v34, %v1307_v34 }
 0x562   : > { %v1316_v53 = vmul.f32 %v1308_v35, %v1308_v35  ;;  %v1317_v58 = vmul.f32 %v1309_v40, %v1309_v40  ;;  %v1318_v63 = vmul.f32 %v1310_v51, %v1310_v51  ;;  %v1319_v11 = vmul.f32 %v1311_v55, %v1311_v55  ;;  %v883_v40 = vld [vmem:[%s2464_s20 + $0x38] sm:$0xff] }
 0x563   : > { %v1320_v49 = vsel %vm722_vm5, %v1312_v36, 0.0  ;;  %v1321_v50 = vsel %vm722_vm5, %v1313_v37, 0.0  ;;  %v1323_v54 = vsel %vm722_vm5, %v1314_v39, 0.0  ;;  %v1325_v59 = vsel %vm722_vm5, %v1315_v44, 0.0  ;;  %v882_v39 = vld [vmem:[%s2464_s20 + $0x30] sm:$0xff] }
 0x564   : > { %v1322_v52 = vadd.f32 %v1321_v50, %v1320_v49  ;;  %v1327_v5 = vsel %vm722_vm5, %v1316_v53, 0.0  ;;  %v1329_v20 = vsel %vm722_vm5, %v1317_v58, 0.0  ;;  %v1331_v25 = vsel %vm722_vm5, %v1318_v63, 0.0 }
 0x565   : > { %v1333_v32 = vsel %vm722_vm5, %v1319_v11, 0.0 }
 0x566   : > { %v1324_v57 = vadd.f32 %v1323_v54, %v1322_v52 }
 0x568   : > { %v2199_v61 = vpop.eup %2198  ;;  %v1326_v2 = vadd.f32 %v1325_v59, %v1324_v57 }
 0x569   : > { %v955_v3 = vmul.f32 %v2199_v61, %v953_v28 }
 0x56a   : > { %v1328_v12 = vadd.f32 %v1327_v5, %v1326_v2  ;;  %v1899_v5 = vld [vmem:[%s2714_s7] ss:$0 sm:$0xff] }
 0x56b   : > { %v957_v19 = vsel %vm956_vm11, %v953_v28, %v955_v3 }
 0x56c   : > { %v960_v23 = vsel %vm958_vm12, %v959_v8, %v957_v19  ;;  %v1330_v24 = vadd.f32 %v1329_v20, %v1328_v12 }
 0x56d   : > { %v961_v26 = vmul.f32 %v960_v23, %v876_v6  ;;  %v962_v27 = vmul.f32 %v960_v23, %v877_v16  ;;  %v963_v29 = vmul.f32 %v960_v23, %v878_v17  ;;  %v964_v30 = vmul.f32 %v960_v23, %v879_v18 }
 0x56e   : > { %v1332_v31 = vadd.f32 %v1331_v25, %v1330_v24  ;;  %v965_v33 = vmul.f32 %v960_v23, %v880_v21  ;;  %v966_v34 = vmul.f32 %v960_v23, %v881_v22  ;;  %v967_v53 = vmul.f32 %v960_v23, %v882_v39  ;;  %v1270_v24 = vld [vmem:[%s2505_s14] sm:$0xff]  ;;  %v1271_v25 = vld [vmem:[%s2505_s14 + $0x8] sm:$0xff] }
 0x56f   : > { %v969_v28 = vadd.f32 %v961_v26, %v2396_v38  ;;  %v970_v35 = vadd.f32 %v962_v27, %v2400_v42  ;;  %v971_v36 = vadd.f32 %v963_v29, %v2398_v41  ;;  %v972_v37 = vadd.f32 %v964_v30, %v2404_v48  ;;  %v1272_v26 = vld [vmem:[%s2505_s14 + $0x10] sm:$0xff]  ;;  %v1273_v29 = vld [vmem:[%s2505_s14 + $0x18] sm:$0xff]  ;;  %v1274_v30 = vld [vmem:[%s2505_s14 + $0x20] sm:$0xff] }
 0x570   : > { %v1334_v44 = vadd.f32 %v1333_v32, %v1332_v31  ;;  %v973_v49 = vadd.f32 %v965_v33, %v2412_v56  ;;  %v974_v50 = vadd.f32 %v966_v34, %v2418_v62  ;;  %v968_v54 = vmul.f32 %v960_v23, %v883_v40  ;;  %v2192_v56 = vld [vmem:[%s2715_s8] sm:$0xff]   ;;  %v2193_v62 = vld [vmem:[%s2715_s8 + $0x8] sm:$0xff]  }
 0x571   : > { %v977_v51 = vpack.c.bf16 %v970_v35, %v969_v28  ;;  %v978_v52 = vpack.c.bf16 %v972_v37, %v971_v36  ;;  %v975_v41 = vadd.f32 %v967_v53, %v2414_v60  ;;  %2100 = vmatprep.subr.bf16.mxu1 %v2192_v56  ;;  %v1275_v31 = vld [vmem:[%s2505_s14 + $0x28] sm:$0xff] }
 0x572   : > { %1335 = vadd.xlane.f32.xlu1 %v1334_v44  ;;  %v979_v38 = vpack.c.bf16 %v974_v50, %v973_v49  ;;  %v976_v42 = vadd.f32 %v968_v54, %v2420_v1 }
 0x573   : > { %2068 = vmatprep.mubr.msk.bf16.mxu1 %vm722_vm5, %v977_v51 }
 0x574   : > { %2069 = vmatmul.mubr.msk.bf16.vlgmr.msra.gmra.mrb[24].mxu1 %vm722_vm5, %v978_v52  ;;  %v980_v48 = vpack.c.bf16 %v976_v42, %v975_v41  ;;  %v1276_v41 = vld [vmem:[%s2505_s14 + $0x30] sm:$0xff]  ;;  %v1277_v42 = vld [vmem:[%s2505_s14 + $0x38] sm:$0xff] }
 0x575   : > { %2072 = vmatprep.mubr.msk.bf16.mxu1 %vm722_vm5, %v979_v38  ;;  %2101 = vmatpush3.bf16.msra.mxu1 %v2192_v56 }
 0x576   : > { %2102 = vmatprep.subr.bf16.mxu1 %v2193_v62 }
 0x579   : > { %2103 = vmatpush3.bf16.msra.mxu1 %v2193_v62 }
 0x57c   : > { %2073 = vmatmul.mubr.msk.bf16.gmra.mrb[28].mxu1 %vm722_vm5, %v980_v48 }
 0x5ff   : > { %v1336_v55 = vpop.xlane.xlu1 %1335 }
 0x600   : > { %v1337_v60 = vrot.slane %v1336_v55, 4 }
 0x602   : > { %v1338_v57 = vadd.f32 %v1337_v60, %v1336_v55 }
 0x604   : > { %v1339_v1 = vrot.slane %v1338_v57, 2 }
 0x606   : > { %v1340_v58 = vadd.f32 %v1339_v1, %v1338_v57 }
 0x608   : > { %v1341_v59 = vrot.slane %v1340_v58, 1 }
 0x60a   : > { %v1342_v61 = vadd.f32 %v1341_v59, %v1340_v58 }
 0x60c   : > { %2150 = vpush %v1342_v61 }
 0x63d   : > { %s2151_s27 = spop %2150 }
 0x63e   : > { %v1344_v63 = vstv %s2151_s27  ;;  %s2214_s27 = smov 16  }
 0x63f   : > { %v1345_v2 = vmul.f32 0.0004885198, %v1344_v63 }
 0x641   : > { %2200 = vrsqrt.f32 %v1345_v2  ;;  %vm1348_vm13 = vcmp.eq.f32.partialorder %v1345_v2, inf  ;;  %v1351_v22 = vand.u32 2147483648, %v1345_v2  ;;  %vm1350_vm14 = vcmp.eq.f32.partialorder %v1345_v2, 0.0 }
 0x647   : > { %v2070_v3 = vpop.f32.mrb[24].mxu1 }
 0x648   : > { %v1050_v6 = vpop.f32.mrb[25].mxu1  ;;  %v1059_v11 = vadd.f32 %v2070_v3, %v1899_v5 }
 0x649   : > { %v2071_v8 = vpop.f32.mrb[26].mxu1  ;;  %v1051_v18 = vadd.f32 %v1899_v5, %v1050_v6 }
 0x64a   : > { %v1062_v12 = vadd.f32 %v2071_v8, %v1899_v5  ;;  %v1053_v16 = vpop.f32.mrb[27].mxu1 }
 0x64b   : > { %v2201_v17 = vpop.eup %2200  ;;  %v1054_v19 = vadd.f32 %v1899_v5, %v1053_v16 }
 0x64c   : > { %v1347_v20 = vmul.f32 %v2201_v17, %v1345_v2  ;;  %v1082_v21 = vpack.c.bf16 %v1062_v12, %v1059_v11 }
 0x64d   : > { %v1081_v23 = vpack.c.bf16 %v1054_v19, %v1051_v18 }
 0x64e   : > { %v1349_v27 = vsel %vm1348_vm13, %v1345_v2, %v1347_v20 }
 0x64f   : > { %v1352_v32 = vsel %vm1350_vm14, %v1351_v22, %v1349_v27  ;;  %v2074_v33 = vpop.f32.mrb[28].mxu1  ;;  %2076 = vmatprep.subr.bf16.mxu0 %v1081_v23  ;;  %v2213_v22 = vmov 0.5  }
 0x650   : > { %v1075_v34 = vadd.f32 %v2074_v33, %v1899_v5  ;;  %v1066_v28 = vpop.f32.mrb[29].mxu1  ;;  %2077 = vmatpush3.bf16.msra.mxu0 %v1081_v23  ;;  %v1353_v35 = vmul.f32 %v1352_v32, %v1270_v24  ;;  %v1354_v36 = vmul.f32 %v1352_v32, %v1271_v25  ;;  %v1355_v37 = vmul.f32 %v1352_v32, %v1272_v26 }
 0x651   : > { %v1067_v39 = vadd.f32 %v1899_v5, %v1066_v28  ;;  %v2075_v40 = vpop.f32.mrb[30].mxu1  ;;  %2078 = vmatprep.subr.bf16.mxu0 %v1082_v21  ;;  %v1356_v44 = vmul.f32 %v1352_v32, %v1273_v29  ;;  %v1357_v49 = vmul.f32 %v1352_v32, %v1274_v30  ;;  %v1358_v50 = vmul.f32 %v1352_v32, %v1275_v31 }
 0x652   : > { %v1078_v51 = vadd.f32 %v2075_v40, %v1899_v5  ;;  %v1069_v52 = vpop.f32.mrb[31].mxu1  ;;  %v1361_v53 = vadd.f32 %v1353_v35, %v2341_v43  ;;  %v1362_v54 = vadd.f32 %v1354_v36, %v2347_v47  ;;  %v1363_v38 = vadd.f32 %v1355_v37, %v2345_v46 }
 0x653   : > { %v1070_v48 = vadd.f32 %v1899_v5, %v1069_v52  ;;  %v1364_v56 = vadd.f32 %v1356_v44, %v2343_v45  ;;  %v1365_v62 = vadd.f32 %v1357_v49, %v2363_v4  ;;  %v1366_v55 = vadd.f32 %v1358_v50, %v2371_v10  ;;  %v2534_v10 = vld [vmem:[%s2707_s0 + $0x20] sm:$0xff]  }
 0x654   : > { %v1084_v60 = vpack.c.bf16 %v1078_v51, %v1075_v34  ;;  %2079 = vmatpush3.bf16.msra.mxu0 %v1082_v21  ;;  %v1369_v57 = vpack.c.bf16 %v1362_v54, %v1361_v53  ;;  %v1359_v59 = vmul.f32 %v1352_v32, %v1276_v41  ;;  %v1360_v43 = vmul.f32 %v1352_v32, %v1277_v42 }
 0x655   : > { %v1083_v1 = vpack.c.bf16 %v1070_v48, %v1067_v39  ;;  %v1370_v58 = vpack.c.bf16 %v1364_v56, %v1363_v38  ;;  %v1371_v47 = vpack.c.bf16 %v1366_v55, %v1365_v62 }
 0x656   : > { %2104 = vmatprep.mubr.msk.bf16.mxu1 %vm722_vm5, %v1369_v57  ;;  %v1367_v45 = vadd.f32 %v1359_v59, %v2369_v9  ;;  %v1368_v46 = vadd.f32 %v1360_v43, %v2365_v7  ;;  %v2543_v7 = vld [vmem:[%s2707_s0 + $0x28] sm:$0xff]  }
 0x657   : > { %2105 = vmatmul.mubr.msk.bf16.vlgmr.msra.gmra.mrb[32].mxu1 %vm722_vm5, %v1370_v58  ;;  %2080 = vmatprep.subr.bf16.mxu0 %v1083_v1 }
 0x658   : > { %2108 = vmatprep.mubr.msk.bf16.mxu1 %vm722_vm5, %v1371_v47  ;;  %2081 = vmatpush3.bf16.msra.mxu0 %v1083_v1  ;;  %v1372_v4 = vpack.c.bf16 %v1368_v46, %v1367_v45 }
 0x659   : > { %2082 = vmatprep.subr.bf16.mxu0 %v1084_v60 }
 0x65c   : > { %2083 = vmatpush3.bf16.msra.mxu0 %v1084_v60 }
 0x65f   : > { %2109 = vmatmul.mubr.msk.bf16.gmra.mrb[36].mxu1 %vm722_vm5, %v1372_v4  ;;  %2085 = vmatmul.mubr.msk.bf16.vlgmr.msra.gmra.mrb[8].mxu0 %vm503_vm0, %v2305_v13  ;;  %v2548_v13 = vld [vmem:[%s2707_s0 + $0x30] sm:$0xff]  }
 0x660   : > { %2088 = vmatprep.mubr.msk.bf16.mxu0 %vm503_vm0, %v2310_v14  ;;  %v2557_v14 = vld [vmem:[%s2707_s0 + $0x38] sm:$0xff]  }
 0x667   : > { %2089 = vmatmul.mubr.msk.bf16.gmra.mrb[12].mxu0 %vm503_vm0, %v2319_v15 }
 0x668   : > { %2092 = vmatprep.mubr.msk.bf16.mxu0 %vm503_vm0, %v2534_v10 }
 0x66f   : > { %2093 = vmatmul.mubr.msk.bf16.gmra.mrb[16].mxu0 %vm503_vm0, %v2543_v7 }
 0x670   : > { %2096 = vmatprep.mubr.msk.bf16.mxu0 %vm503_vm0, %v2548_v13 }
 0x677   : > { %2097 = vmatmul.mubr.msk.bf16.gmra.mrb[20].mxu0 %vm503_vm0, %v2557_v14 }
 0x678   : > { %2128 = vmatprep.mubr.msk.bf16.mxu0 %vm503_vm0, %v2292_v0 }
 0x72a   : > { %v2563_v15 = vpop.f32.mrb[32].mxu1 }
 0x72b   : > { %v2565_v9 = vpop.f32.mrb[33].mxu1 }
 0x72c   : > { %v2567_v61 = vpop.f32.mrb[34].mxu1 }
 0x72d   : > { %v2569_v63 = vpop.f32.mrb[35].mxu1 }
 0x732   : > { %v2571_v2 = vpop.f32.mrb[36].mxu1  ;;  %v2086_v3 = vpop.f32.mrb[8].mxu0 }
 0x733   : > { %v2573_v5 = vpop.f32.mrb[37].mxu1  ;;  %v1151_v6 = vpop.f32.mrb[9].mxu0 }
 0x734   : > { %v2575_v8 = vpop.f32.mrb[38].mxu1  ;;  %v2087_v11 = vpop.f32.mrb[10].mxu0 }
 0x735   : > { %v2577_v12 = vpop.f32.mrb[39].mxu1  ;;  %v1154_v0 = vpop.f32.mrb[11].mxu0 }
 0x73a   : > { %v2090_v16 = vpop.f32.mrb[12].mxu0 }
 0x73b   : > { %v1167_v17 = vpop.f32.mrb[13].mxu0 }
 0x73c   : > { %v2091_v18 = vpop.f32.mrb[14].mxu0 }
 0x73d   : > { %v1170_v19 = vpop.f32.mrb[15].mxu0 }
 0x742   : > { %v2094_v20 = vpop.f32.mrb[16].mxu0 }
 0x743   : > { %vm1216_vm15 = vcmp.ge.f32.partialorder %v2094_v20, 0.0  ;;  %v1183_v21 = vpop.f32.mrb[17].mxu0 }
 0x744   : > { %v1224_v23 = vsel %vm1216_vm15, 1.0, %v2213_v22  ;;  %vm1214_vm2 = vcmp.ge.f32.partialorder %v1183_v21, 0.0  ;;  %v2095_v24 = vpop.f32.mrb[18].mxu0 }
 0x745   : > { %v1232_v25 = vmul.f32 %v2094_v20, %v1224_v23  ;;  %v1222_v26 = vsel %vm1214_vm2, 1.0, %v2213_v22  ;;  %vm1217_vm3 = vcmp.ge.f32.partialorder %v2095_v24, 0.0  ;;  %v1186_v27 = vpop.f32.mrb[19].mxu0 }
 0x746   : > { %v1230_v29 = vmul.f32 %v1222_v26, %v1183_v21  ;;  %v1225_v30 = vsel %vm1217_vm3, 1.0, %v2213_v22  ;;  %vm1215_vm4 = vcmp.ge.f32.partialorder %v1186_v27, 0.0 }
 0x747   : > { %v1240_v31 = vadd.f32 %v2086_v3, %v1232_v25  ;;  %v1233_v32 = vmul.f32 %v2095_v24, %v1225_v30  ;;  %v1223_v33 = vsel %vm1215_vm4, 1.0, %v2213_v22  ;;  %v1918_v24 = vld [vmem:[%s2716_s9] ss:$0 sm:$0xff] }
 0x748   : > { %v1238_v34 = vadd.f32 %v1230_v29, %v1151_v6  ;;  %v1231_v28 = vmul.f32 %v1223_v33, %v1186_v27 }
 0x749   : > { %vm1248_vm6 = vcmp.gt.f32.partialorder %v1240_v31, 0.0  ;;  %v1256_v35 = vmul.f32 0.25, %v1240_v31  ;;  %v1241_v36 = vadd.f32 %v2087_v11, %v1233_v32 }
 0x74a   : > { %vm1246_vm7 = vcmp.gt.f32.partialorder %v1238_v34, 0.0  ;;  %v1254_v37 = vmul.f32 0.25, %v1238_v34  ;;  %v1239_v39 = vadd.f32 %v1231_v28, %v1154_v0  ;;  %v2098_v40 = vpop.f32.mrb[20].mxu0 }
 0x74b   : > { %v1264_v44 = vsel %vm1248_vm6, %v1240_v31, %v1256_v35  ;;  %vm1249_vm8 = vcmp.gt.f32.partialorder %v1241_v36, 0.0  ;;  %v1257_v49 = vmul.f32 0.25, %v1241_v36  ;;  %vm1220_vm9 = vcmp.ge.f32.partialorder %v2098_v40, 0.0  ;;  %v1199_v50 = vpop.f32.mrb[21].mxu0 }
 0x74c   : > { %v1262_v51 = vsel %vm1246_vm7, %v1238_v34, %v1254_v37  ;;  %vm1247_vm10 = vcmp.gt.f32.partialorder %v1239_v39, 0.0  ;;  %v1255_v52 = vmul.f32 0.25, %v1239_v39  ;;  %v1228_v53 = vsel %vm1220_vm9, 1.0, %v2213_v22  ;;  %v2099_v54 = vpop.f32.mrb[22].mxu0 }
 0x74d   : > { %v1265_v38 = vsel %vm1249_vm8, %v1241_v36, %v1257_v49  ;;  %v1236_v41 = vmul.f32 %v2098_v40, %v1228_v53  ;;  %vm1218_vm11 = vcmp.ge.f32.partialorder %v1199_v50, 0.0  ;;  %vm1221_vm12 = vcmp.ge.f32.partialorder %v2099_v54, 0.0  ;;  %v1202_v42 = vpop.f32.mrb[23].mxu0 }
 0x74e   : > { %v1263_v48 = vsel %vm1247_vm10, %v1239_v39, %v1255_v52  ;;  %v1226_v56 = vsel %vm1218_vm11, 1.0, %v2213_v22  ;;  %v1229_v62 = vsel %vm1221_vm12, 1.0, %v2213_v22  ;;  %vm1219_vm13 = vcmp.ge.f32.partialorder %v1202_v42, 0.0 }
 0x74f   : > { %v1244_v55 = vadd.f32 %v2090_v16, %v1236_v41  ;;  %v1234_v60 = vmul.f32 %v1226_v56, %v1199_v50  ;;  %v1237_v57 = vmul.f32 %v2099_v54, %v1229_v62  ;;  %v1227_v1 = vsel %vm1219_vm13, 1.0, %v2213_v22 }
 0x750   : > { %v1235_v58 = vmul.f32 %v1227_v1, %v1202_v42  ;;  %v1373_v59 = vpack.c.bf16 %v1263_v48, %v1262_v51  ;;  %v1374_v43 = vpack.c.bf16 %v1265_v38, %v1264_v44  ;;  %v1467_v52 = vadd.f32 %v2563_v15, %v1918_v24 }
 0x751   : > { %v1242_v47 = vadd.f32 %v1234_v60, %v1167_v17  ;;  %v1245_v45 = vadd.f32 %v2091_v18, %v1237_v57  ;;  %v1260_v46 = vmul.f32 0.25, %v1244_v55  ;;  %vm1252_vm14 = vcmp.gt.f32.partialorder %v1244_v55, 0.0 }
 0x752   : > { %v1243_v4 = vadd.f32 %v1235_v58, %v1170_v19  ;;  %2112 = vmatprep.mubr.msk.bf16.mxu1 %vm722_vm5, %v1373_v59  ;;  %v1470_v53 = vadd.f32 %v2567_v61, %v1918_v24  ;;  %v1459_v42 = vadd.f32 %v1918_v24, %v2565_v9  ;;  %v1462_v48 = vadd.f32 %v1918_v24, %v2569_v63 }
 0x753   : > { %vm1250_vm15 = vcmp.gt.f32.partialorder %v1242_v47, 0.0  ;;  %v1258_v3 = vmul.f32 0.25, %v1242_v47  ;;  %vm1253_vm2 = vcmp.gt.f32.partialorder %v1245_v45, 0.0  ;;  %2113 = vmatmul.mubr.msk.bf16.gmra.mrb[40].mxu1 %vm722_vm5, %v1374_v43  ;;  %v1261_v6 = vmul.f32 0.25, %v1245_v45 }
 0x754   : > { %vm1251_vm3 = vcmp.gt.f32.partialorder %v1243_v4, 0.0  ;;  %v1259_v11 = vmul.f32 0.25, %v1243_v4  ;;  %v1268_v0 = vsel %vm1252_vm14, %v1244_v55, %v1260_v46  ;;  %v1475_v9 = vadd.f32 %v1918_v24, %v2573_v5 }
 0x755   : > { %v1266_v16 = vsel %vm1250_vm15, %v1242_v47, %v1258_v3  ;;  %v1269_v20 = vsel %vm1253_vm2, %v1245_v45, %v1261_v6  ;;  %v1478_v63 = vadd.f32 %v1918_v24, %v2577_v12  ;;  %v1483_v3 = vadd.f32 %v2571_v2, %v1918_v24  ;;  %v2203_v2 = vld [vmem:[%s2707_s0 + $0x10] sm:$0xff]  }
 0x756   : > { %v1267_v21 = vsel %vm1251_vm3, %v1243_v4, %v1259_v11  ;;  %v1376_v17 = vpack.c.bf16 %v1269_v20, %v1268_v0  ;;  %v1486_v6 = vadd.f32 %v2575_v8, %v1918_v24  ;;  %v2202_v20 = vld [vmem:[%s2707_s0 + $0x8] sm:$0xff]   ;;  %v2204_v8 = vld [vmem:[%s2707_s0 + $0x18] sm:$0xff]  }
 0x757   : > { %v1375_v23 = vpack.c.bf16 %v1267_v21, %v1266_v16 }
 0x759   : > { %2116 = vmatprep.mubr.msk.bf16.mxu1 %vm722_vm5, %v1375_v23 }
 0x75b   : > { %2117 = vmatmul.mubr.msk.bf16.gmra.mrb[44].mxu1 %vm722_vm5, %v1376_v17 }
 0x826   : > { %v2114_v18 = vpop.f32.mrb[40].mxu1 }
 0x827   : > { %v1490_v19 = vpop.f32.mrb[41].mxu1  ;;  %v1499_v26 = vadd.f32 %v2114_v18, %v1918_v24 }
 0x828   : > { %v2115_v25 = vpop.f32.mrb[42].mxu1  ;;  %v1491_v30 = vadd.f32 %v1918_v24, %v1490_v19 }
 0x829   : > { %v1502_v27 = vadd.f32 %v2115_v25, %v1918_v24  ;;  %v1493_v29 = vpop.f32.mrb[43].mxu1 }
 0x82a   : > { %v1494_v31 = vadd.f32 %v1918_v24, %v1493_v29 }
 0x82b   : > { %v2168_v32 = vpack.i.bf16 %v1502_v27, %v1499_v26 }
 0x82c   : > { %v2163_v33 = vpack.i.bf16 %v1494_v31, %v1491_v30 }
 0x82d   : > { %2169 = vrot.lane.b32.xlu1 %v2168_v32, %s2214_s27 }
 0x82e   : > { %2164 = vrot.lane.b32.xlu0 %v2163_v33, %s2214_s27  ;;  %v2118_v34 = vpop.f32.mrb[44].mxu1 }
 0x82f   : > { %v1506_v28 = vpop.f32.mrb[45].mxu1  ;;  %v1515_v36 = vadd.f32 %v2118_v34, %v1918_v24 }
 0x830   : > { %v2119_v35 = vpop.f32.mrb[46].mxu1  ;;  %v1507_v40 = vadd.f32 %v1918_v24, %v1506_v28 }
 0x831   : > { %v1518_v37 = vadd.f32 %v2119_v35, %v1918_v24  ;;  %v1509_v39 = vpop.f32.mrb[47].mxu1 }
 0x832   : > { %v1510_v44 = vadd.f32 %v1918_v24, %v1509_v39 }
 0x833   : > { %v2178_v49 = vpack.i.bf16 %v1518_v37, %v1515_v36 }
 0x834   : > { %v2173_v50 = vpack.i.bf16 %v1510_v44, %v1507_v40 }
 0x836   : > { %2174 = vrot.lane.b32.xlu1 %v2173_v50, %s2214_s27 }
 0x83a   : > { %2179 = vrot.lane.b32.xlu1 %v2178_v49, %s2214_s27 }
 0x89f   : > { %v2170_v51 = vpop.permute.xlu1 %2169 }
 0x8a0   : > { %v2172_v54 = vunpack.i.h.bf16 %v2170_v51  ;;  %v2171_v38 = vunpack.i.l.bf16 %v2170_v51  ;;  %v2165_v41 = vpop.permute.xlu0 %2164 }
 0x8a1   : > { %v2167_v56 = vunpack.i.h.bf16 %v2165_v41  ;;  %v2166_v62 = vunpack.i.l.bf16 %v2165_v41 }
 0x8a2   : > { %v1555_v55 = vsel %vm600_vm1, %v1467_v52, %v2171_v38  ;;  %v1556_v60 = vsel %vm600_vm1, %v1470_v53, %v2172_v54 }
 0x8a3   : > { %v1553_v57 = vsel %vm600_vm1, %v1459_v42, %v2166_v62  ;;  %v1554_v1 = vsel %vm600_vm1, %v1462_v48, %v2167_v56  ;;  %v1562_v15 = vpack.c.bf16 %v1556_v60, %v1555_v55 }
 0x8a4   : > { %v1561_v58 = vpack.c.bf16 %v1554_v1, %v1553_v57 }
 0x8a6   : > { %2120 = vmatprep.subr.bf16.mxu0 %v1561_v58 }
 0x8a7   : > { %2121 = vmatpush3.bf16.msra.mxu0 %v1561_v58 }
 0x8a8   : > { %2122 = vmatprep.subr.bf16.mxu0 %v1562_v15  ;;  %v2175_v61 = vpop.permute.xlu1 %2174 }
 0x8a9   : > { %v2177_v59 = vunpack.i.h.bf16 %v2175_v61  ;;  %v2176_v43 = vunpack.i.l.bf16 %v2175_v61 }
 0x8ab   : > { %2123 = vmatpush3.bf16.msra.mxu0 %v1562_v15  ;;  %v1557_v47 = vsel %vm600_vm1, %v1475_v9, %v2176_v43  ;;  %v1558_v45 = vsel %vm600_vm1, %v1478_v63, %v2177_v59 }
 0x8ac   : > { %v2180_v46 = vpop.permute.xlu1 %2179  ;;  %v1563_v4 = vpack.c.bf16 %v1558_v45, %v1557_v47 }
 0x8ad   : > { %v2182_v11 = vunpack.i.h.bf16 %v2180_v46  ;;  %v2181_v0 = vunpack.i.l.bf16 %v2180_v46 }
 0x8ae   : > { %2124 = vmatprep.subr.bf16.mxu0 %v1563_v4 }
 0x8af   : > { %2125 = vmatpush3.bf16.msra.mxu0 %v1563_v4  ;;  %v1559_v5 = vsel %vm600_vm1, %v1483_v3, %v2181_v0  ;;  %v1560_v12 = vsel %vm600_vm1, %v1486_v6, %v2182_v11 }
 0x8b0   : > { %v1564_v16 = vpack.c.bf16 %v1560_v12, %v1559_v5 }
 0x8b2   : > { %2126 = vmatprep.subr.bf16.mxu0 %v1564_v16 }
 0x8b3   : > { %2127 = vmatpush3.bf16.msra.mxu0 %v1564_v16 }
 0x8b6   : > { %2129 = vmatmul.mubr.msk.bf16.vlgmr.msra.gmra.mrb[24].mxu0 %vm503_vm0, %v2202_v20 }
 0x8b7   : > { %2132 = vmatprep.mubr.msk.bf16.mxu0 %vm503_vm0, %v2203_v2 }
 0x8be   : > { %2133 = vmatmul.mubr.msk.bf16.gmra.mrb[28].mxu0 %vm503_vm0, %v2204_v8 }
 0x8bf   : > { %2136 = vmatprep.mubr.msk.bf16.mxu0 %vm503_vm0, %v2534_v10 }
 0x8c6   : > { %2137 = vmatmul.mubr.msk.bf16.gmra.mrb[32].mxu0 %vm503_vm0, %v2543_v7 }
 0x8c7   : > { %2140 = vmatprep.mubr.msk.bf16.mxu0 %vm503_vm0, %v2548_v13 }
 0x8ce   : > { %2141 = vmatmul.mubr.msk.bf16.gmra.mrb[36].mxu0 %vm503_vm0, %v2557_v14 }
 0x989   : > { %v2630_v21 = vpop.f32.mrb[24].mxu0 }
 0x98a   : > { %1674 = vrot.lane.b32.xlu0 %v2630_v21, %s2215_s16  ;;  %v2634_v23 = vpop.f32.mrb[25].mxu0 }
 0x98b   : > { %v2131_v17 = vpop.f32.mrb[26].mxu0 }
 0x98c   : > { %1676 = vrot.lane.b32.xlu1 %v2131_v17, %s2215_s16  ;;  %v2637_v10 = vpop.f32.mrb[27].mxu0 }
 0x98e   : > { %1670 = vrot.lane.b32.xlu0 %v2634_v23, %s2215_s16 }
 0x990   : > { %1672 = vrot.lane.b32.xlu1 %v2637_v10, %s2215_s16 }
 0x991   : > { %v2643_v7 = vpop.f32.mrb[28].mxu0 }
 0x992   : > { %1682 = vrot.lane.b32.xlu0 %v2643_v7, %s2215_s16  ;;  %v2647_v13 = vpop.f32.mrb[29].mxu0 }
 0x993   : > { %v2649_v14 = vpop.f32.mrb[30].mxu0 }
 0x994   : > { %1684 = vrot.lane.b32.xlu1 %v2649_v14, %s2215_s16  ;;  %v2653_v18 = vpop.f32.mrb[31].mxu0 }
 0x996   : > { %1678 = vrot.lane.b32.xlu0 %v2647_v13, %s2215_s16 }
 0x998   : > { %1680 = vrot.lane.b32.xlu1 %v2653_v18, %s2215_s16 }
 0x999   : > { %v2138_v19 = vpop.f32.mrb[32].mxu0 }
 0x99a   : > { %vm1704_vm0 = vcmp.ge.f32.partialorder %v2138_v19, 0.0  ;;  %v1631_v24 = vpop.f32.mrb[33].mxu0 }
 0x99b   : > { %v1712_v25 = vsel %vm1704_vm0, 1.0, %v2213_v22  ;;  %vm1702_vm5 = vcmp.ge.f32.partialorder %v1631_v24, 0.0  ;;  %v2139_v26 = vpop.f32.mrb[34].mxu0 }
 0x99c   : > { %v1720_v27 = vmul.f32 %v2138_v19, %v1712_v25  ;;  %vm1705_vm4 = vcmp.ge.f32.partialorder %v2139_v26, 0.0  ;;  %v1634_v29 = vpop.f32.mrb[35].mxu0  ;;  %v1710_v30 = vsel %vm1702_vm5, 1.0, %v2213_v22 }
 0x99d   : > { %v1713_v31 = vsel %vm1705_vm4, 1.0, %v2213_v22  ;;  %vm1703_vm6 = vcmp.ge.f32.partialorder %v1634_v29, 0.0  ;;  %v1718_v34 = vmul.f32 %v1710_v30, %v1631_v24 }
 0x99e   : > { %v1721_v32 = vmul.f32 %v2139_v26, %v1713_v31  ;;  %1746 = vrot.lane.b32.xlu0 %v1720_v27, %s2215_s16  ;;  %v1711_v33 = vsel %vm1703_vm6, 1.0, %v2213_v22 }
 0x99f   : > { %v1719_v35 = vmul.f32 %v1711_v33, %v1634_v29 }
 0x9a0   : > { %1748 = vrot.lane.b32.xlu1 %v1721_v32, %s2215_s16 }
 0x9a1   : > { %v2142_v28 = vpop.f32.mrb[36].mxu0 }
 0x9a2   : > { %1742 = vrot.lane.b32.xlu0 %v1718_v34, %s2215_s16  ;;  %v1647_v36 = vpop.f32.mrb[37].mxu0  ;;  %vm1708_vm7 = vcmp.ge.f32.partialorder %v2142_v28, 0.0 }
 0x9a3   : > { %vm1706_vm8 = vcmp.ge.f32.partialorder %v1647_v36, 0.0  ;;  %v2143_v37 = vpop.f32.mrb[38].mxu0  ;;  %v1716_v49 = vsel %vm1708_vm7, 1.0, %v2213_v22 }
 0x9a4   : > { %v1714_v39 = vsel %vm1706_vm8, 1.0, %v2213_v22  ;;  %1744 = vrot.lane.b32.xlu1 %v1719_v35, %s2215_s16  ;;  %v1650_v40 = vpop.f32.mrb[39].mxu0  ;;  %vm1709_vm9 = vcmp.ge.f32.partialorder %v2143_v37, 0.0  ;;  %v1724_v53 = vmul.f32 %v2142_v28, %v1716_v49 }
 0x9a5   : > { %v1722_v44 = vmul.f32 %v1714_v39, %v1647_v36  ;;  %vm1707_vm10 = vcmp.ge.f32.partialorder %v1650_v40, 0.0  ;;  %v1717_v52 = vsel %vm1709_vm9, 1.0, %v2213_v22 }
 0x9a6   : > { %v1715_v50 = vsel %vm1707_vm10, 1.0, %v2213_v22  ;;  %v1725_v54 = vmul.f32 %v2143_v37, %v1717_v52 }
 0x9a7   : > { %v1723_v51 = vmul.f32 %v1715_v50, %v1650_v40  ;;  %1750 = vrot.lane.b32.xlu0 %v1722_v44, %s2215_s16 }
 0x9a9   : > { %1752 = vrot.lane.b32.xlu1 %v1723_v51, %s2215_s16 }
 0x9ab   : > { %1754 = vrot.lane.b32.xlu0 %v1724_v53, %s2215_s16 }
 0x9ad   : > { %1756 = vrot.lane.b32.xlu1 %v1725_v54, %s2215_s16 }
 0x9fc   : > { %v1675_v38 = vpop.permute.xlu0 %1674 }
 0x9fd   : > { %v1696_v55 = vadd.f32 %v2630_v21, %v1675_v38 }
 0x9fe   : > { %v1677_v41 = vpop.permute.xlu1 %1676 }
 0x9ff   : > { %v1697_v57 = vadd.f32 %v2131_v17, %v1677_v41  ;;  %v1728_v15 = vadd.f32 %v1720_v27, %v1696_v55 }
 0xa00   : > { %v1671_v42 = vpop.permute.xlu0 %1670 }
 0xa01   : > { %v1694_v1 = vadd.f32 %v1671_v42, %v2634_v23  ;;  %v1729_v63 = vadd.f32 %v1721_v32, %v1697_v57 }
 0xa02   : > { %v1673_v48 = vpop.permute.xlu1 %1672 }
 0xa03   : > { %v1695_v61 = vadd.f32 %v1673_v48, %v2637_v10  ;;  %v1726_v47 = vadd.f32 %v1718_v34, %v1694_v1 }
 0xa04   : > { %v1683_v56 = vpop.permute.xlu0 %1682 }
 0xa05   : > { %v1727_v3 = vadd.f32 %v1719_v35, %v1695_v61  ;;  %v1700_v5 = vadd.f32 %v2643_v7, %v1683_v56 }
 0xa06   : > { %v1685_v62 = vpop.permute.xlu1 %1684 }
 0xa07   : > { %v1701_v20 = vadd.f32 %v2649_v14, %v1685_v62  ;;  %v1732_v17 = vadd.f32 %v1724_v53, %v1700_v5 }
 0xa08   : > { %v1679_v60 = vpop.permute.xlu0 %1678 }
 0xa09   : > { %v1698_v45 = vadd.f32 %v1679_v60, %v2647_v13  ;;  %v1733_v7 = vadd.f32 %v1725_v54, %v1701_v20 }
 0xa0a   : > { %v1681_v22 = vpop.permute.xlu1 %1680 }
 0xa0b   : > { %v1699_v6 = vadd.f32 %v1681_v22, %v2653_v18  ;;  %v1730_v12 = vadd.f32 %v1722_v44, %v1698_v45 }
 0xa0d   : > { %v1731_v8 = vadd.f32 %v1723_v51, %v1699_v6 }
 0xa10   : > { %v1747_v58 = vpop.permute.xlu0 %1746 }
 0xa11   : > { %v1768_v9 = vadd.f32 %v1747_v58, %v1728_v15 }
 0xa12   : > { %v1749_v59 = vpop.permute.xlu1 %1748 }
 0xa13   : > { %1776 = vst.msk [vmem:[%s2681_s19 + $0x10] sm:$0xff] %vm600_vm1, %v1768_v9  ;;  %v1769_v43 = vadd.f32 %v1749_v59, %v1729_v63 }
 0xa14   : > { %v1743_v46 = vpop.permute.xlu0 %1742 }
 0xa15   : > { %1777 = vst.msk [vmem:[%s2681_s19 + $0x18] sm:$0xff] %vm600_vm1, %v1769_v43  ;;  %v1766_v4 = vadd.f32 %v1743_v46, %v1726_v47 }
 0xa16   : > { %v1745_v11 = vpop.permute.xlu1 %1744 }
 0xa17   : > { %1774 = vst.msk [vmem:[%s2681_s19] sm:$0xff] %vm600_vm1, %v1766_v4  ;;  %v1767_v0 = vadd.f32 %v1745_v11, %v1727_v3 }
 0xa19   : > { %1775 = vst.msk [vmem:[%s2681_s19 + $0x8] sm:$0xff] %vm600_vm1, %v1767_v0  ;;  %v1751_v16 = vpop.permute.xlu0 %1750 }
 0xa1a   : > { %v1770_v2 = vadd.f32 %v1751_v16, %v1730_v12 }
 0xa1b   : > { %v1753_v21 = vpop.permute.xlu1 %1752 }
 0xa1c   : > { %1778 = vst.msk [vmem:[%s2681_s19 + $0x20] sm:$0xff] %vm600_vm1, %v1770_v2  ;;  %v1771_v23 = vadd.f32 %v1753_v21, %v1731_v8 }
 0xa1d   : > { %v1755_v10 = vpop.permute.xlu0 %1754 }
 0xa1e   : > { %1779 = vst.msk [vmem:[%s2681_s19 + $0x28] sm:$0xff] %vm600_vm1, %v1771_v23  ;;  %v1772_v13 = vadd.f32 %v1755_v10, %v1732_v17 }
 0xa1f   : > { %v1757_v18 = vpop.permute.xlu1 %1756 }
 0xa20   : > { %1780 = vst.msk [vmem:[%s2681_s19 + $0x30] sm:$0xff] %vm600_vm1, %v1772_v13  ;;  %v1773_v19 = vadd.f32 %v1757_v18, %v1733_v7 }
 0xa22   : > { %1781 = vst.msk [vmem:[%s2681_s19 + $0x38] sm:$0xff] %vm600_vm1, %v1773_v19 }
 0xa23 PF: > { %s22_s21 = sadd.s32 1, %s2211_s21  }
 0xa24   : > { %p19_p4 = scmp.ge.s32.totalorder %s22_s21, 6  }
 0xa26   :  { %21 = sbr.rel (!%p19_p4) target bundleno = 1 (0x1), region = 104 }

</bundles_post_ra>
